<compile_context>
chip_gen: v5e
topology: v5e:2x2
jax: 0.10.0
libtpu: 0.0.40
codegen_flags: <defaults>
</compile_context>

<pallas_src>
import functools

import jax
import jax.numpy as jnp
import numpy as np
from jax.experimental import pallas as pl
from jax.experimental.pallas import tpu as pltpu


def _round_up(x, m):
    return (x + m - 1) // m * m


def _pick_images_per_step(n, ohw):
    """Smallest divisor G of n with G*ohw >= 128 output lanes (else G = n)."""
    for g in range(1, n + 1):
        if n % g == 0 and g * ohw >= 128:
            return g
    return n


# --------------------------------------------------------------------------------- kernel
def discblk_kernel(*refs, shifts, downsample, conv_shortcut, oc, icp, hcp):
    it = iter(refs)
    x_ref = next(it)        # (icp, Tg)      f32   activation slab for this image group
    m_ref = next(it)        # (16, Tg)       f32   rows 0..8 = per-tap border masks
    w1_ref = next(it)       # (hcp, 9*icp)   bf16  fused tap-major conv1 weights
    b1_ref = next(it)       # (hcp, 1)       f32
    w2_ref = next(it)       # (oc, 9*hcp)    bf16
    b2_ref = next(it)       # (oc, 1)        f32
    ws_ref = next(it) if conv_shortcut else None    # (oc, icp) bf16
    bs_ref = next(it) if conv_shortcut else None    # (oc, 1)   f32
    pool_ref = next(it) if downsample else None     # (Tg, Tog) f32 block-diag 0.25
    out_ref = next(it)      # (oc, Tog)
    zs1_ref = next(it)      # (9*icp, Tg) f32 scratch
    zs2_ref = next(it)      # (9*hcp, Tg) f32 scratch

    x = x_ref[...]                                  # (icp, Tg)
    xr = jnp.maximum(x, 0.0)                        # leading ReLU (main branch only)

    def conv3x3(z, zs_ref, w_ref, b_ref, c):
        # 8 shifted copies via XLU lane rolls + VPU border masks, written straight into
        # the scratch; center tap (shift 0) stored as-is.  One fused MXU contraction K=9*c.
        for t, s in enumerate(shifts):
            if s == 0:
                zs_ref[t * c:(t + 1) * c, :] = z
            else:
                zs_ref[t * c:(t + 1) * c, :] = pltpu.roll(z, s, 1) * m_ref[t:t + 1, :]
        zs = zs_ref[...].astype(w_ref.dtype)        # bf16 at the MXU feed, f32 accumulate
        return jnp.dot(w_ref[...], zs, preferred_element_type=jnp.float32) + b_ref[...]

    h1 = jnp.maximum(conv3x3(xr, zs1_ref, w1_ref, b1_ref, icp), 0.0)    # (hcp, Tg)
    y = conv3x3(h1, zs2_ref, w2_ref, b2_ref, hcp)                       # (oc , Tg)

    if conv_shortcut:
        sc = jnp.dot(ws_ref[...], x.astype(ws_ref.dtype),
                     preferred_element_type=jnp.float32) + bs_ref[...]
    else:
        sc = x[0:oc, :]                             # identity shortcut (ic == oc)

    s = y + sc
    if downsample:
        # avg-pool is linear: pool(y) + pool(sc) == pool(y + sc); one lane-dense MXU dot
        s = jnp.dot(s, pool_ref[...], preferred_element_type=jnp.float32)
    out_ref[...] = s.astype(out_ref.dtype)


# ----------------------------------------------------------------------- host constants
def _tap_masks_np(G, H, W):
    """(16, G*HW) f32; row t in [0,9): 1 where the tap-t neighbour stays inside its image."""
    HW = H * W
    p = np.arange(HW)
    h, w = p // W, p % W
    rows = []
    for dy in (-1, 0, 1):
        for dx in (-1, 0, 1):
            ok = (h + dy >= 0) & (h + dy < H) & (w + dx >= 0) & (w + dx < W)
            rows.append(ok.astype(np.float32))
    m = np.tile(np.stack(rows, 0), (1, G))          # same mask for each image of the group
    return np.pad(m, ((0, 16 - 9), (0, 0)))


def _tap_shifts(G, H, W):
    """Lane-roll amount per tap so rolled[p] = x[p + dy*W + dx] (borders handled by masks)."""
    tg = G * H * W
    return tuple((-(dy * W + dx)) % tg for dy in (-1, 0, 1) for dx in (-1, 0, 1))


def _pool_matrix_np(G, H, W):
    """(G*HW, G*OHW) block-diagonal AvgPool2d(2) matrix; size independent of batch N."""
    OH, OW = H // 2, W // 2
    HW, OHW = H * W, OH * OW
    P = np.zeros((G * HW, G * OHW), np.float32)
    p = np.arange(G * HW)
    g, h, w = p // HW, (p % HW) // W, p % W
    P[p, g * OHW + (h // 2) * OW + (w // 2)] = 0.25
    return P


# ------------------------------------------------------------------------------ JAX glue
def spectral_normalize(w, key, n_iter=1, eps=1e-12):
    """Mimics torch.nn.utils.spectral_norm: one power iteration on W.reshape(out, -1)."""
    out_c = w.shape[0]
    wm = w.reshape(out_c, -1)
    u = jax.random.normal(key, (out_c,), jnp.float32)
    u = u / (jnp.linalg.norm(u) + eps)
    v = None
    for _ in range(n_iter):
        v = wm.T @ u
        v = v / (jnp.linalg.norm(v) + eps)
        u = wm @ v
        u = u / (jnp.linalg.norm(u) + eps)
    sigma = u @ (wm @ v)
    return w / sigma


@functools.partial(jax.jit, static_argnames=("downsample",))
def discblk_forward(x_nchw, w1, b1, w2, b2, ws, bs, *, downsample):
    """x_nchw: (N, ic, H, W). Weights in PyTorch OIHW layout (already spectral-normalized)."""
    N, ic, H, W = x_nchw.shape
    hc, oc = w1.shape[0], w2.shape[0]
    conv_shortcut = (ic != oc) or downsample
    if conv_shortcut and not downsample:
        raise ValueError("ic != oc with downsample=False is shape-inconsistent in DiscBlk")

    HW = H * W
    OH, OW = (H // 2, W // 2) if downsample else (H, W)
    OHW = OH * OW
    G = _pick_images_per_step(N, OHW)       # images per grid step (>=128 output lanes)
    steps = N // G
    Tg, Tog = G * HW, G * OHW

    icp, hcp = _round_up(ic, 8), _round_up(hc, 8)

    # NCHW -> (icp, N*HW): channels on sublanes (zero-padded to 8), flat (n,h,w) on lanes.
    x_flat = jnp.transpose(x_nchw.reshape(N, ic, HW), (1, 0, 2)).reshape(ic, N * HW)
    x_flat = jnp.pad(x_flat.astype(jnp.float32), ((0, icp - ic), (0, 0)))

    # fused tap-major weights: Wf[o, t*Cp + i] = w[o, i, kh, kw], t = kh*3 + kw  (bf16 feed)
    w1t = jnp.transpose(w1.astype(jnp.float32), (0, 2, 3, 1))           # (hc, 3, 3, ic)
    w1f = jnp.pad(w1t, ((0, hcp - hc), (0, 0), (0, 0), (0, icp - ic))
                  ).reshape(hcp, 9 * icp).astype(jnp.bfloat16)
    w2t = jnp.transpose(w2.astype(jnp.float32), (0, 2, 3, 1))           # (oc, 3, 3, hc)
    w2f = jnp.pad(w2t, ((0, 0), (0, 0), (0, 0), (0, hcp - hc))
                  ).reshape(oc, 9 * hcp).astype(jnp.bfloat16)
    b1c = jnp.pad(b1.astype(jnp.float32).reshape(hc, 1), ((0, hcp - hc), (0, 0)))
    b2c = b2.astype(jnp.float32).reshape(oc, 1)

    masks = jnp.asarray(_tap_masks_np(G, H, W))                         # (16, Tg)
    shifts = _tap_shifts(G, H, W)

    operands = [x_flat, masks, w1f, b1c, w2f, b2c]
    in_specs = [
        pl.BlockSpec((icp, Tg), lambda i: (0, i)),      # per-step image-group slab
        pl.BlockSpec(masks.shape, lambda i: (0, 0)),    # grid-invariant (DMA'd once)
        pl.BlockSpec(w1f.shape, lambda i: (0, 0)),
        pl.BlockSpec(b1c.shape, lambda i: (0, 0)),
        pl.BlockSpec(w2f.shape, lambda i: (0, 0)),
        pl.BlockSpec(b2c.shape, lambda i: (0, 0)),
    ]
    if conv_shortcut:
        wsc = jnp.pad(ws[:, :, 0, 0].astype(jnp.float32),
                      ((0, 0), (0, icp - ic))).astype(jnp.bfloat16)     # (oc, icp)
        bsc = bs.astype(jnp.float32).reshape(oc, 1)
        operands += [wsc, bsc]
        in_specs += [pl.BlockSpec(wsc.shape, lambda i: (0, 0)),
                     pl.BlockSpec(bsc.shape, lambda i: (0, 0))]
    if downsample:
        poolc = jnp.asarray(_pool_matrix_np(G, H, W))                   # (Tg, Tog)
        operands += [poolc]
        in_specs += [pl.BlockSpec(poolc.shape, lambda i: (0, 0))]

    kernel = functools.partial(discblk_kernel, shifts=shifts, downsample=downsample,
                               conv_shortcut=conv_shortcut, oc=oc, icp=icp, hcp=hcp)

    out_flat = pl.pallas_call(
        kernel,
        out_shape=jax.ShapeDtypeStruct((oc, N * OHW), jnp.float32),
        grid=(steps,),
        in_specs=in_specs,
        out_specs=pl.BlockSpec((oc, Tog), lambda i: (0, i)),
        scratch_shapes=[pltpu.VMEM((9 * icp, Tg), jnp.float32),
                        pltpu.VMEM((9 * hcp, Tg), jnp.float32)],
        compiler_params=pltpu.CompilerParams(
            dimension_semantics=("parallel",),
            # per-step live VMEM here is ~1 MiB; raise this when lane tiles grow, but keep
            # the v7x budget (64 MiB physical) in mind.
            vmem_limit_bytes=32 * 1024 * 1024),
    )(*operands)

    # (oc, N*OH*OW) -> NCHW
    return jnp.transpose(out_flat.reshape(oc, N, OH, OW), (1, 0, 2, 3))


# -------------------------------------------------------------------- reference (plain JAX)
def reference_discblk(x, w1, b1, w2, b2, ws, bs, downsample):
    def conv(z, w, b, pad):
        y = jax.lax.conv_general_dilated(
            z, w, window_strides=(1, 1), padding=[(pad, pad), (pad, pad)],
            dimension_numbers=("NCHW", "OIHW", "NCHW"),
            precision=jax.lax.Precision.HIGHEST)
        return y + b[None, :, None, None]

    def avgpool(z):
        n, c, h, w = z.shape
        return z.reshape(n, c, h // 2, 2, w // 2, 2).mean(axis=(3, 5))

    h = conv(jax.nn.relu(x), w1, b1, 1)
    y = conv(jax.nn.relu(h), w2, b2, 1)
    main = avgpool(y) if downsample else y
    ic, oc = x.shape[1], w2.shape[0]
    if (ic != oc) or downsample:
        sc = avgpool(conv(x, ws, bs, 0))
    else:
        sc = x
    return main + sc


# ------------------------------------------------------------------------------------ main
if __name__ == "__main__":
    ic, hc, oc = 4, 8, 8
    downsample = True
    N, H, W = 4, 16, 16          # N=4 -> 2 images per grid step (128 output lanes), grid=(2,)

    key = jax.random.PRNGKey(0)
    keys = jax.random.split(key, 8)
    x = jax.random.normal(keys[0], (N, ic, H, W), jnp.float32)

    # Deterministic synthetic parameters (Conv2d shapes from __init__), then spectral norm.
    w1 = 0.2 * jax.random.normal(keys[1], (hc, ic, 3, 3), jnp.float32)
    b1 = 0.1 * jax.random.normal(keys[2], (hc,), jnp.float32)
    w2 = 0.2 * jax.random.normal(keys[3], (oc, hc, 3, 3), jnp.float32)
    b2 = 0.1 * jax.random.normal(keys[4], (oc,), jnp.float32)
    ws = 0.2 * jax.random.normal(keys[5], (oc, ic, 1, 1), jnp.float32)
    bs = 0.1 * jax.random.normal(keys[6], (oc,), jnp.float32)

    # NOTE: torch.nn.utils.spectral_norm keeps u as a persistent buffer; here a fresh u is
    # drawn per call, which is fine for this self-consistent check (wrapper-side only).
    w1sn = spectral_normalize(w1, jax.random.fold_in(keys[7], 1))
    w2sn = spectral_normalize(w2, jax.random.fold_in(keys[7], 2))
    wssn = spectral_normalize(ws, jax.random.fold_in(keys[7], 3))

    out = discblk_forward(x, w1sn, b1, w2sn, b2, wssn, bs, downsample=downsample)
    out = jax.block_until_ready(out)

    ref = reference_discblk(x, w1sn, b1, w2sn, b2, wssn, bs, downsample)
    # bf16 MXU feed with f32 accumulation vs. an f32 reference -> loosened tolerance.
    np.testing.assert_allclose(np.asarray(out), np.asarray(ref), rtol=2e-2, atol=2e-2)

    print("KERNEL_OK")
</pallas_src>

<mosaic_0001>
module attributes {stable_mosaic.version = 11 : i64} {
  func.func @discblk_kernel(%arg0: i32, %arg1: memref<8x512xf32, #tpu.memory_space<vmem>>, %arg2: memref<16x512xf32, #tpu.memory_space<vmem>>, %arg3: memref<8x72xbf16, #tpu.memory_space<vmem>>, %arg4: memref<8x1xf32, #tpu.memory_space<vmem>>, %arg5: memref<8x72xbf16, #tpu.memory_space<vmem>>, %arg6: memref<8x1xf32, #tpu.memory_space<vmem>>, %arg7: memref<8x8xbf16, #tpu.memory_space<vmem>>, %arg8: memref<8x1xf32, #tpu.memory_space<vmem>>, %arg9: memref<512x128xf32, #tpu.memory_space<vmem>>, %arg10: memref<8x128xf32, #tpu.memory_space<vmem>>, %arg11: memref<72x512xf32, #tpu.memory_space<vmem>>, %arg12: memref<72x512xf32, #tpu.memory_space<vmem>>) attributes {dimension_semantics = [#tpu.dimension_semantics<parallel>], iteration_bounds = array<i64: 2>, scalar_prefetch = 0 : i64, scratch_operands = 2 : i64, tpu.core_type = #tpu.core_type<tc>, window_params = [{transform_indices = @transform_0, window_bounds = array<i64: 8, 512>}, {pipeline_mode = #tpu.pipeline_mode<synchronous>, transform_indices = @transform_1, window_bounds = array<i64: 16, 512>}, {pipeline_mode = #tpu.pipeline_mode<synchronous>, transform_indices = @transform_2, window_bounds = array<i64: 8, 72>}, {pipeline_mode = #tpu.pipeline_mode<synchronous>, transform_indices = @transform_3, window_bounds = array<i64: 8, 1>}, {pipeline_mode = #tpu.pipeline_mode<synchronous>, transform_indices = @transform_4, window_bounds = array<i64: 8, 72>}, {pipeline_mode = #tpu.pipeline_mode<synchronous>, transform_indices = @transform_5, window_bounds = array<i64: 8, 1>}, {pipeline_mode = #tpu.pipeline_mode<synchronous>, transform_indices = @transform_6, window_bounds = array<i64: 8, 8>}, {pipeline_mode = #tpu.pipeline_mode<synchronous>, transform_indices = @transform_7, window_bounds = array<i64: 8, 1>}, {pipeline_mode = #tpu.pipeline_mode<synchronous>, transform_indices = @transform_8, window_bounds = array<i64: 512, 128>}, {transform_indices = @transform_9, window_bounds = array<i64: 8, 128>}]} {
    %c0 = arith.constant 0 : index
    %c0_0 = arith.constant 0 : index
    %0 = vector.load %arg1[%c0, %c0_0] : memref<8x512xf32, #tpu.memory_space<vmem>>, vector<8x512xf32>
    %cst = arith.constant 0.000000e+00 : f32
    %1 = vector.broadcast %cst : f32 to vector<8x512xf32>
    %2 = arith.maximumf %0, %1 : vector<8x512xf32>
    %c17_i32 = arith.constant 17 : i32
    %3 = tpu.dynamic_rotate %2 by %c17_i32 dim 1 : vector<8x512xf32>, i32 -> vector<8x512xf32>
    %c0_1 = arith.constant 0 : index
    %c0_2 = arith.constant 0 : index
    %4 = vector.load %arg2[%c0_1, %c0_2] : memref<16x512xf32, #tpu.memory_space<vmem>>, vector<1x512xf32>
    %5 = vector.broadcast %4 : vector<1x512xf32> to vector<8x512xf32>
    %6 = arith.mulf %3, %5 : vector<8x512xf32>
    %c0_3 = arith.constant 0 : index
    %c0_4 = arith.constant 0 : index
    %7 = vector.load %arg11[%c0_3, %c0_4] : memref<72x512xf32, #tpu.memory_space<vmem>>, vector<8x512xf32>
    tpu.vector_store %arg11[%c0_3, %c0_4], %6 {strides = array<i32>} : memref<72x512xf32, #tpu.memory_space<vmem>>, vector<8x512xf32>,
    %c16_i32 = arith.constant 16 : i32
    %8 = tpu.dynamic_rotate %2 by %c16_i32 dim 1 : vector<8x512xf32>, i32 -> vector<8x512xf32>
    %c1 = arith.constant 1 : index
    %c0_5 = arith.constant 0 : index
    %9 = vector.load %arg2[%c1, %c0_5] : memref<16x512xf32, #tpu.memory_space<vmem>>, vector<1x512xf32>
    %10 = vector.broadcast %9 : vector<1x512xf32> to vector<8x512xf32>
    %11 = arith.mulf %8, %10 : vector<8x512xf32>
    %c8 = arith.constant 8 : index
    %c0_6 = arith.constant 0 : index
    %12 = vector.load %arg11[%c8, %c0_6] : memref<72x512xf32, #tpu.memory_space<vmem>>, vector<8x512xf32>
    tpu.vector_store %arg11[%c8, %c0_6], %11 {strides = array<i32>} : memref<72x512xf32, #tpu.memory_space<vmem>>, vector<8x512xf32>,
    %c15_i32 = arith.constant 15 : i32
    %13 = tpu.dynamic_rotate %2 by %c15_i32 dim 1 : vector<8x512xf32>, i32 -> vector<8x512xf32>
    %c2 = arith.constant 2 : index
    %c0_7 = arith.constant 0 : index
    %14 = vector.load %arg2[%c2, %c0_7] : memref<16x512xf32, #tpu.memory_space<vmem>>, vector<1x512xf32>
    %15 = vector.broadcast %14 : vector<1x512xf32> to vector<8x512xf32>
    %16 = arith.mulf %13, %15 : vector<8x512xf32>
    %c16 = arith.constant 16 : index
    %c0_8 = arith.constant 0 : index
    %17 = vector.load %arg11[%c16, %c0_8] : memref<72x512xf32, #tpu.memory_space<vmem>>, vector<8x512xf32>
    tpu.vector_store %arg11[%c16, %c0_8], %16 {strides = array<i32>} : memref<72x512xf32, #tpu.memory_space<vmem>>, vector<8x512xf32>,
    %c1_i32 = arith.constant 1 : i32
    %18 = tpu.dynamic_rotate %2 by %c1_i32 dim 1 : vector<8x512xf32>, i32 -> vector<8x512xf32>
    %c3 = arith.constant 3 : index
    %c0_9 = arith.constant 0 : index
    %19 = vector.load %arg2[%c3, %c0_9] : memref<16x512xf32, #tpu.memory_space<vmem>>, vector<1x512xf32>
    %20 = vector.broadcast %19 : vector<1x512xf32> to vector<8x512xf32>
    %21 = arith.mulf %18, %20 : vector<8x512xf32>
    %c24 = arith.constant 24 : index
    %c0_10 = arith.constant 0 : index
    %22 = vector.load %arg11[%c24, %c0_10] : memref<72x512xf32, #tpu.memory_space<vmem>>, vector<8x512xf32>
    tpu.vector_store %arg11[%c24, %c0_10], %21 {strides = array<i32>} : memref<72x512xf32, #tpu.memory_space<vmem>>, vector<8x512xf32>,
    %c32 = arith.constant 32 : index
    %c0_11 = arith.constant 0 : index
    %23 = vector.load %arg11[%c32, %c0_11] : memref<72x512xf32, #tpu.memory_space<vmem>>, vector<8x512xf32>
    tpu.vector_store %arg11[%c32, %c0_11], %2 {strides = array<i32>} : memref<72x512xf32, #tpu.memory_space<vmem>>, vector<8x512xf32>,
    %c511_i32 = arith.constant 511 : i32
    %24 = tpu.dynamic_rotate %2 by %c511_i32 dim 1 : vector<8x512xf32>, i32 -> vector<8x512xf32>
    %c5 = arith.constant 5 : index
    %c0_12 = arith.constant 0 : index
    %25 = vector.load %arg2[%c5, %c0_12] : memref<16x512xf32, #tpu.memory_space<vmem>>, vector<1x512xf32>
    %26 = vector.broadcast %25 : vector<1x512xf32> to vector<8x512xf32>
    %27 = arith.mulf %24, %26 : vector<8x512xf32>
    %c40 = arith.constant 40 : index
    %c0_13 = arith.constant 0 : index
    %28 = vector.load %arg11[%c40, %c0_13] : memref<72x512xf32, #tpu.memory_space<vmem>>, vector<8x512xf32>
    tpu.vector_store %arg11[%c40, %c0_13], %27 {strides = array<i32>} : memref<72x512xf32, #tpu.memory_space<vmem>>, vector<8x512xf32>,
    %c497_i32 = arith.constant 497 : i32
    %29 = tpu.dynamic_rotate %2 by %c497_i32 dim 1 : vector<8x512xf32>, i32 -> vector<8x512xf32>
    %c6 = arith.constant 6 : index
    %c0_14 = arith.constant 0 : index
    %30 = vector.load %arg2[%c6, %c0_14] : memref<16x512xf32, #tpu.memory_space<vmem>>, vector<1x512xf32>
    %31 = vector.broadcast %30 : vector<1x512xf32> to vector<8x512xf32>
    %32 = arith.mulf %29, %31 : vector<8x512xf32>
    %c48 = arith.constant 48 : index
    %c0_15 = arith.constant 0 : index
    %33 = vector.load %arg11[%c48, %c0_15] : memref<72x512xf32, #tpu.memory_space<vmem>>, vector<8x512xf32>
    tpu.vector_store %arg11[%c48, %c0_15], %32 {strides = array<i32>} : memref<72x512xf32, #tpu.memory_space<vmem>>, vector<8x512xf32>,
    %c496_i32 = arith.constant 496 : i32
    %34 = tpu.dynamic_rotate %2 by %c496_i32 dim 1 : vector<8x512xf32>, i32 -> vector<8x512xf32>
    %c7 = arith.constant 7 : index
    %c0_16 = arith.constant 0 : index
    %35 = vector.load %arg2[%c7, %c0_16] : memref<16x512xf32, #tpu.memory_space<vmem>>, vector<1x512xf32>
    %36 = vector.broadcast %35 : vector<1x512xf32> to vector<8x512xf32>
    %37 = arith.mulf %34, %36 : vector<8x512xf32>
    %c56 = arith.constant 56 : index
    %c0_17 = arith.constant 0 : index
    %38 = vector.load %arg11[%c56, %c0_17] : memref<72x512xf32, #tpu.memory_space<vmem>>, vector<8x512xf32>
    tpu.vector_store %arg11[%c56, %c0_17], %37 {strides = array<i32>} : memref<72x512xf32, #tpu.memory_space<vmem>>, vector<8x512xf32>,
    %c495_i32 = arith.constant 495 : i32
    %39 = tpu.dynamic_rotate %2 by %c495_i32 dim 1 : vector<8x512xf32>, i32 -> vector<8x512xf32>
    %c8_18 = arith.constant 8 : index
    %c0_19 = arith.constant 0 : index
    %40 = vector.load %arg2[%c8_18, %c0_19] : memref<16x512xf32, #tpu.memory_space<vmem>>, vector<1x512xf32>
    %41 = vector.broadcast %40 : vector<1x512xf32> to vector<8x512xf32>
    %42 = arith.mulf %39, %41 : vector<8x512xf32>
    %c64 = arith.constant 64 : index
    %c0_20 = arith.constant 0 : index
    %43 = vector.load %arg11[%c64, %c0_20] : memref<72x512xf32, #tpu.memory_space<vmem>>, vector<8x512xf32>
    tpu.vector_store %arg11[%c64, %c0_20], %42 {strides = array<i32>} : memref<72x512xf32, #tpu.memory_space<vmem>>, vector<8x512xf32>,
    %c0_21 = arith.constant 0 : index
    %c0_22 = arith.constant 0 : index
    %44 = vector.load %arg11[%c0_21, %c0_22] : memref<72x512xf32, #tpu.memory_space<vmem>>, vector<72x512xf32>
    %45 = arith.truncf %44 : vector<72x512xf32> to vector<72x512xbf16>
    %c0_23 = arith.constant 0 : index
    %c0_24 = arith.constant 0 : index
    %46 = vector.load %arg3[%c0_23, %c0_24] : memref<8x72xbf16, #tpu.memory_space<vmem>>, vector<8x72xbf16>
    %cst_25 = arith.constant dense<0.000000e+00> : vector<8x512xf32>
    %47 = tpu.matmul %46, %45, %cst_25 {dimension_numbers = #tpu.dot_dimension_numbers<[1], [0], [0], [1], [0, 0, 1, 1], [], []>} : vector<8x72xbf16>, vector<72x512xbf16>, vector<8x512xf32> -> vector<8x512xf32>
    %c0_26 = arith.constant 0 : index
    %c0_27 = arith.constant 0 : index
    %48 = vector.load %arg4[%c0_26, %c0_27] : memref<8x1xf32, #tpu.memory_space<vmem>>, vector<8x1xf32>
    %49 = vector.broadcast %48 : vector<8x1xf32> to vector<8x512xf32>
    %50 = arith.addf %47, %49 : vector<8x512xf32>
    %cst_28 = arith.constant 0.000000e+00 : f32
    %51 = vector.broadcast %cst_28 : f32 to vector<8x512xf32>
    %52 = arith.maximumf %50, %51 : vector<8x512xf32>
    %c17_i32_29 = arith.constant 17 : i32
    %53 = tpu.dynamic_rotate %52 by %c17_i32_29 dim 1 : vector<8x512xf32>, i32 -> vector<8x512xf32>
    %c0_30 = arith.constant 0 : index
    %c0_31 = arith.constant 0 : index
    %54 = vector.load %arg2[%c0_30, %c0_31] : memref<16x512xf32, #tpu.memory_space<vmem>>, vector<1x512xf32>
    %55 = vector.broadcast %54 : vector<1x512xf32> to vector<8x512xf32>
    %56 = arith.mulf %53, %55 : vector<8x512xf32>
    %c0_32 = arith.constant 0 : index
    %c0_33 = arith.constant 0 : index
    %57 = vector.load %arg12[%c0_32, %c0_33] : memref<72x512xf32, #tpu.memory_space<vmem>>, vector<8x512xf32>
    tpu.vector_store %arg12[%c0_32, %c0_33], %56 {strides = array<i32>} : memref<72x512xf32, #tpu.memory_space<vmem>>, vector<8x512xf32>,
    %c16_i32_34 = arith.constant 16 : i32
    %58 = tpu.dynamic_rotate %52 by %c16_i32_34 dim 1 : vector<8x512xf32>, i32 -> vector<8x512xf32>
    %c1_35 = arith.constant 1 : index
    %c0_36 = arith.constant 0 : index
    %59 = vector.load %arg2[%c1_35, %c0_36] : memref<16x512xf32, #tpu.memory_space<vmem>>, vector<1x512xf32>
    %60 = vector.broadcast %59 : vector<1x512xf32> to vector<8x512xf32>
    %61 = arith.mulf %58, %60 : vector<8x512xf32>
    %c8_37 = arith.constant 8 : index
    %c0_38 = arith.constant 0 : index
    %62 = vector.load %arg12[%c8_37, %c0_38] : memref<72x512xf32, #tpu.memory_space<vmem>>, vector<8x512xf32>
    tpu.vector_store %arg12[%c8_37, %c0_38], %61 {strides = array<i32>} : memref<72x512xf32, #tpu.memory_space<vmem>>, vector<8x512xf32>,
    %c15_i32_39 = arith.constant 15 : i32
    %63 = tpu.dynamic_rotate %52 by %c15_i32_39 dim 1 : vector<8x512xf32>, i32 -> vector<8x512xf32>
    %c2_40 = arith.constant 2 : index
    %c0_41 = arith.constant 0 : index
    %64 = vector.load %arg2[%c2_40, %c0_41] : memref<16x512xf32, #tpu.memory_space<vmem>>, vector<1x512xf32>
    %65 = vector.broadcast %64 : vector<1x512xf32> to vector<8x512xf32>
    %66 = arith.mulf %63, %65 : vector<8x512xf32>
    %c16_42 = arith.constant 16 : index
    %c0_43 = arith.constant 0 : index
    %67 = vector.load %arg12[%c16_42, %c0_43] : memref<72x512xf32, #tpu.memory_space<vmem>>, vector<8x512xf32>
    tpu.vector_store %arg12[%c16_42, %c0_43], %66 {strides = array<i32>} : memref<72x512xf32, #tpu.memory_space<vmem>>, vector<8x512xf32>,
    %c1_i32_44 = arith.constant 1 : i32
    %68 = tpu.dynamic_rotate %52 by %c1_i32_44 dim 1 : vector<8x512xf32>, i32 -> vector<8x512xf32>
    %c3_45 = arith.constant 3 : index
    %c0_46 = arith.constant 0 : index
    %69 = vector.load %arg2[%c3_45, %c0_46] : memref<16x512xf32, #tpu.memory_space<vmem>>, vector<1x512xf32>
    %70 = vector.broadcast %69 : vector<1x512xf32> to vector<8x512xf32>
    %71 = arith.mulf %68, %70 : vector<8x512xf32>
    %c24_47 = arith.constant 24 : index
    %c0_48 = arith.constant 0 : index
    %72 = vector.load %arg12[%c24_47, %c0_48] : memref<72x512xf32, #tpu.memory_space<vmem>>, vector<8x512xf32>
    tpu.vector_store %arg12[%c24_47, %c0_48], %71 {strides = array<i32>} : memref<72x512xf32, #tpu.memory_space<vmem>>, vector<8x512xf32>,
    %c32_49 = arith.constant 32 : index
    %c0_50 = arith.constant 0 : index
    %73 = vector.load %arg12[%c32_49, %c0_50] : memref<72x512xf32, #tpu.memory_space<vmem>>, vector<8x512xf32>
    tpu.vector_store %arg12[%c32_49, %c0_50], %52 {strides = array<i32>} : memref<72x512xf32, #tpu.memory_space<vmem>>, vector<8x512xf32>,
    %c511_i32_51 = arith.constant 511 : i32
    %74 = tpu.dynamic_rotate %52 by %c511_i32_51 dim 1 : vector<8x512xf32>, i32 -> vector<8x512xf32>
    %c5_52 = arith.constant 5 : index
    %c0_53 = arith.constant 0 : index
    %75 = vector.load %arg2[%c5_52, %c0_53] : memref<16x512xf32, #tpu.memory_space<vmem>>, vector<1x512xf32>
    %76 = vector.broadcast %75 : vector<1x512xf32> to vector<8x512xf32>
    %77 = arith.mulf %74, %76 : vector<8x512xf32>
    %c40_54 = arith.constant 40 : index
    %c0_55 = arith.constant 0 : index
    %78 = vector.load %arg12[%c40_54, %c0_55] : memref<72x512xf32, #tpu.memory_space<vmem>>, vector<8x512xf32>
    tpu.vector_store %arg12[%c40_54, %c0_55], %77 {strides = array<i32>} : memref<72x512xf32, #tpu.memory_space<vmem>>, vector<8x512xf32>,
    %c497_i32_56 = arith.constant 497 : i32
    %79 = tpu.dynamic_rotate %52 by %c497_i32_56 dim 1 : vector<8x512xf32>, i32 -> vector<8x512xf32>
    %c6_57 = arith.constant 6 : index
    %c0_58 = arith.constant 0 : index
    %80 = vector.load %arg2[%c6_57, %c0_58] : memref<16x512xf32, #tpu.memory_space<vmem>>, vector<1x512xf32>
    %81 = vector.broadcast %80 : vector<1x512xf32> to vector<8x512xf32>
    %82 = arith.mulf %79, %81 : vector<8x512xf32>
    %c48_59 = arith.constant 48 : index
    %c0_60 = arith.constant 0 : index
    %83 = vector.load %arg12[%c48_59, %c0_60] : memref<72x512xf32, #tpu.memory_space<vmem>>, vector<8x512xf32>
    tpu.vector_store %arg12[%c48_59, %c0_60], %82 {strides = array<i32>} : memref<72x512xf32, #tpu.memory_space<vmem>>, vector<8x512xf32>,
    %c496_i32_61 = arith.constant 496 : i32
    %84 = tpu.dynamic_rotate %52 by %c496_i32_61 dim 1 : vector<8x512xf32>, i32 -> vector<8x512xf32>
    %c7_62 = arith.constant 7 : index
    %c0_63 = arith.constant 0 : index
    %85 = vector.load %arg2[%c7_62, %c0_63] : memref<16x512xf32, #tpu.memory_space<vmem>>, vector<1x512xf32>
    %86 = vector.broadcast %85 : vector<1x512xf32> to vector<8x512xf32>
    %87 = arith.mulf %84, %86 : vector<8x512xf32>
    %c56_64 = arith.constant 56 : index
    %c0_65 = arith.constant 0 : index
    %88 = vector.load %arg12[%c56_64, %c0_65] : memref<72x512xf32, #tpu.memory_space<vmem>>, vector<8x512xf32>
    tpu.vector_store %arg12[%c56_64, %c0_65], %87 {strides = array<i32>} : memref<72x512xf32, #tpu.memory_space<vmem>>, vector<8x512xf32>,
    %c495_i32_66 = arith.constant 495 : i32
    %89 = tpu.dynamic_rotate %52 by %c495_i32_66 dim 1 : vector<8x512xf32>, i32 -> vector<8x512xf32>
    %c8_67 = arith.constant 8 : index
    %c0_68 = arith.constant 0 : index
    %90 = vector.load %arg2[%c8_67, %c0_68] : memref<16x512xf32, #tpu.memory_space<vmem>>, vector<1x512xf32>
    %91 = vector.broadcast %90 : vector<1x512xf32> to vector<8x512xf32>
    %92 = arith.mulf %89, %91 : vector<8x512xf32>
    %c64_69 = arith.constant 64 : index
    %c0_70 = arith.constant 0 : index
    %93 = vector.load %arg12[%c64_69, %c0_70] : memref<72x512xf32, #tpu.memory_space<vmem>>, vector<8x512xf32>
    tpu.vector_store %arg12[%c64_69, %c0_70], %92 {strides = array<i32>} : memref<72x512xf32, #tpu.memory_space<vmem>>, vector<8x512xf32>,
    %c0_71 = arith.constant 0 : index
    %c0_72 = arith.constant 0 : index
    %94 = vector.load %arg12[%c0_71, %c0_72] : memref<72x512xf32, #tpu.memory_space<vmem>>, vector<72x512xf32>
    %95 = arith.truncf %94 : vector<72x512xf32> to vector<72x512xbf16>
    %c0_73 = arith.constant 0 : index
    %c0_74 = arith.constant 0 : index
    %96 = vector.load %arg5[%c0_73, %c0_74] : memref<8x72xbf16, #tpu.memory_space<vmem>>, vector<8x72xbf16>
    %cst_75 = arith.constant dense<0.000000e+00> : vector<8x512xf32>
    %97 = tpu.matmul %96, %95, %cst_75 {dimension_numbers = #tpu.dot_dimension_numbers<[1], [0], [0], [1], [0, 0, 1, 1], [], []>} : vector<8x72xbf16>, vector<72x512xbf16>, vector<8x512xf32> -> vector<8x512xf32>
    %c0_76 = arith.constant 0 : index
    %c0_77 = arith.constant 0 : index
    %98 = vector.load %arg6[%c0_76, %c0_77] : memref<8x1xf32, #tpu.memory_space<vmem>>, vector<8x1xf32>
    %99 = vector.broadcast %98 : vector<8x1xf32> to vector<8x512xf32>
    %100 = arith.addf %97, %99 : vector<8x512xf32>
    %c0_78 = arith.constant 0 : index
    %c0_79 = arith.constant 0 : index
    %101 = vector.load %arg7[%c0_78, %c0_79] : memref<8x8xbf16, #tpu.memory_space<vmem>>, vector<8x8xbf16>
    %102 = arith.truncf %0 : vector<8x512xf32> to vector<8x512xbf16>
    %cst_80 = arith.constant dense<0.000000e+00> : vector<8x512xf32>
    %103 = tpu.matmul %101, %102, %cst_80 {dimension_numbers = #tpu.dot_dimension_numbers<[1], [0], [0], [1], [0, 0, 1, 1], [], []>} : vector<8x8xbf16>, vector<8x512xbf16>, vector<8x512xf32> -> vector<8x512xf32>
    %c0_81 = arith.constant 0 : index
    %c0_82 = arith.constant 0 : index
    %104 = vector.load %arg8[%c0_81, %c0_82] : memref<8x1xf32, #tpu.memory_space<vmem>>, vector<8x1xf32>
    %105 = vector.broadcast %104 : vector<8x1xf32> to vector<8x512xf32>
    %106 = arith.addf %103, %105 : vector<8x512xf32>
    %107 = arith.addf %100, %106 : vector<8x512xf32>
    %c0_83 = arith.constant 0 : index
    %c0_84 = arith.constant 0 : index
    %108 = vector.load %arg9[%c0_83, %c0_84] : memref<512x128xf32, #tpu.memory_space<vmem>>, vector<512x128xf32>
    %cst_85 = arith.constant dense<0.000000e+00> : vector<8x128xf32>
    %109 = tpu.matmul %107, %108, %cst_85 {dimension_numbers = #tpu.dot_dimension_numbers<[1], [0], [0], [1], [0, 0, 1, 1], [], []>} : vector<8x512xf32>, vector<512x128xf32>, vector<8x128xf32> -> vector<8x128xf32>
    %c0_86 = arith.constant 0 : index
    %c0_87 = arith.constant 0 : index
    %110 = vector.load %arg10[%c0_86, %c0_87] : memref<8x128xf32, #tpu.memory_space<vmem>>, vector<8x128xf32>
    tpu.vector_store %arg10[%c0_86, %c0_87], %109 {strides = array<i32>} : memref<8x128xf32, #tpu.memory_space<vmem>>, vector<8x128xf32>,
    return
  }
  func.func @transform_0(%arg0: i32) -> (i32, i32) {
    %c0_i32 = arith.constant 0 : i32
    %c0_i32_0 = arith.constant 0 : i32
    return %c0_i32, %arg0 : i32, i32
  }
  func.func @transform_1(%arg0: i32) -> (i32, i32) {
    %c0_i32 = arith.constant 0 : i32
    %c0_i32_0 = arith.constant 0 : i32
    %c0_i32_1 = arith.constant 0 : i32
    return %c0_i32, %c0_i32_0 : i32, i32
  }
  func.func @transform_2(%arg0: i32) -> (i32, i32) {
    %c0_i32 = arith.constant 0 : i32
    %c0_i32_0 = arith.constant 0 : i32
    %c0_i32_1 = arith.constant 0 : i32
    return %c0_i32, %c0_i32_0 : i32, i32
  }
  func.func @transform_3(%arg0: i32) -> (i32, i32) {
    %c0_i32 = arith.constant 0 : i32
    %c0_i32_0 = arith.constant 0 : i32
    %c0_i32_1 = arith.constant 0 : i32
    return %c0_i32, %c0_i32_0 : i32, i32
  }
  func.func @transform_4(%arg0: i32) -> (i32, i32) {
    %c0_i32 = arith.constant 0 : i32
    %c0_i32_0 = arith.constant 0 : i32
    %c0_i32_1 = arith.constant 0 : i32
    return %c0_i32, %c0_i32_0 : i32, i32
  }
  func.func @transform_5(%arg0: i32) -> (i32, i32) {
    %c0_i32 = arith.constant 0 : i32
    %c0_i32_0 = arith.constant 0 : i32
    %c0_i32_1 = arith.constant 0 : i32
    return %c0_i32, %c0_i32_0 : i32, i32
  }
  func.func @transform_6(%arg0: i32) -> (i32, i32) {
    %c0_i32 = arith.constant 0 : i32
    %c0_i32_0 = arith.constant 0 : i32
    %c0_i32_1 = arith.constant 0 : i32
    return %c0_i32, %c0_i32_0 : i32, i32
  }
  func.func @transform_7(%arg0: i32) -> (i32, i32) {
    %c0_i32 = arith.constant 0 : i32
    %c0_i32_0 = arith.constant 0 : i32
    %c0_i32_1 = arith.constant 0 : i32
    return %c0_i32, %c0_i32_0 : i32, i32
  }
  func.func @transform_8(%arg0: i32) -> (i32, i32) {
    %c0_i32 = arith.constant 0 : i32
    %c0_i32_0 = arith.constant 0 : i32
    %c0_i32_1 = arith.constant 0 : i32
    return %c0_i32, %c0_i32_0 : i32, i32
  }
  func.func @transform_9(%arg0: i32) -> (i32, i32) {
    %c0_i32 = arith.constant 0 : i32
    %c0_i32_0 = arith.constant 0 : i32
    return %c0_i32, %arg0 : i32, i32
  }
}

</mosaic_0001>

<bundles_post_ra>
// kernel: discblk_forward.1
= control target key start
LH: loop header
LB: loop body
LE: loop exit
PB: predicated region body
PF: predicated region fallthrough
CT: control target
= control target key end

     0   :  { %s1516_s30 = smov 0   ;;  %s2293_s0 = inlined_call_operand.vmem [shape: f32[8,1024], index: 0, kind: input, shape index: {}]   ;;  %s2294_s1 = inlined_call_operand.vmem [shape: f32[16,512], index: 1, kind: input, shape index: {}]   ;;  %s2295_s2 = inlined_call_operand.vmem [shape: bf16[8,72], index: 2, kind: input, shape index: {}]   ;;  %s2296_s3 = inlined_call_operand.vmem [shape: f32[8,1], index: 3, kind: input, shape index: {}]   ;;  %s2297_s4 = inlined_call_operand.vmem [shape: bf16[8,72], index: 4, kind: input, shape index: {}]   ;;  %s2298_s5 = inlined_call_operand.vmem [shape: f32[8,1], index: 5, kind: input, shape index: {}]   ;;  %s2299_s6 = inlined_call_operand.vmem [shape: bf16[8,8], index: 6, kind: input, shape index: {}]   ;;  %s2300_s7 = inlined_call_operand.vmem [shape: f32[8,1], index: 7, kind: input, shape index: {}]   ;;  %s2301_s8 = inlined_call_operand.vmem [shape: f32[512,128], index: 8, kind: input, shape index: {}]   ;;  %s2302_s9 = inlined_call_operand.vmem [shape: f32[8,256], index: 9, kind: output, shape index: {}]  }
   0x1 LB: > { %s1522_s10 = sadd.s32 4294967295, %s1455_s30   ;;  %p1398_p0 = scmp.ge.s32.totalorder %s1455_s30, 1  ;;  %s1455_s30 = sphi %s1516_s30, %s19_s30  }
   0x2   : > { %p288_p1 = scmp.lt.s32.totalorder %s1455_s30, 3 }
   0x4   : > { %p289_p2 = pnand %p1398_p0, %p288_p1 }
   0x5   : > { %s1399_s11 = sshll.u32 (!%p289_p2), %s1522_s10, 2  ;;  %s1457_s16 = smov (!%p289_p2), 111  }
   0x6   : > { %292 = sbr.rel (%p289_p2) target bundleno = 836 (0x344), region = 56  ;;  %p324_p3 = scmp.lt.s32.totalorder (!%p289_p2), %s1399_s11, 7 }
   0x7   : > { %s1458_s17 = smov (!%p289_p2), 113   ;;  %s1459_s18 = smov (!%p289_p2), 112  }
   0x8   : > { %s1460_s19 = smov (!%p289_p2), 127   ;;  %s1461_s20 = smov (!%p289_p2), 15  }
   0x9   : > { %s1462_s21 = smov (!%p289_p2), 1   ;;  %s1463_s22 = smov (!%p289_p2), 17  }
   0xa   : > { %s1464_s23 = smov (!%p289_p2), 16   ;;  %p329_p4 = scmp.lt.s32.totalorder (!%p289_p2), %s1522_s10, 1 }
   0xb   : > { %s2304_s11 = smov (!%p324_p3, %s1399_s11), 7  ;;  %v350_v9 = vlaneseq  ;;  %v1408_v12 = vld [vmem:[%s2294_s1 + $0x20] ss:$8 sm:$0xf]  ;;  %vm670_vm1 = vcmask 1043456   ;;  %vm666_vm9 = vcmask 588800  }
   0xc   : > { %s1400_s12 = sshll.u32 %s2304_s11, 3  ;;  %v590_v13 = vperm.slane %v1408_v12, 3  ;;  %v589_v21 = vperm.slane %v1408_v12, 2  ;;  %v1632_v25 = vld [vmem:[%s2294_s1 + $0x6] ss:$8 sm:$0xf] }
   0xd   : > { %s327_s15 = scalar_lea.vmem %s2293_s0, %s1400_s12  ;;  %v1616_v11 = vand.u32 127, %v350_v9  ;;  %v1637_v27 = vld [vmem:[%s2294_s1 + $0x7] ss:$8 sm:$0xf]  ;;  %v525_v30 = vperm.slane %v1632_v25, 2  ;;  %v526_v33 = vperm.slane %v1632_v25, 3 }
   0xe   : > { %v1530_v0 = vld [vmem:[%s327_s15 + $0x18] sm:$0xff]  ;;  %v1532_v1 = vld [vmem:[%s327_s15 + $0x10] sm:$0xff]  ;;  %v1534_v2 = vld [vmem:[%s327_s15] sm:$0xff]  ;;  %v557_v31 = vperm.slane %v1637_v27, 2  ;;  %v558_v35 = vperm.slane %v1637_v27, 3  ;;  %v587_v48 = vperm.slane %v1408_v12, 0 }
   0xf   : > { %v1537_v3 = vmax.f32 %v1530_v0, 0.0  ;;  %v1540_v4 = vmax.f32 %v1532_v1, 0.0  ;;  %v1543_v5 = vmax.f32 %v1534_v2, 0.0  ;;  %v1563_v6 = vld [vmem:[%s327_s15 + $0x8] sm:$0xff]  ;;  %vm579_vm0 = vcmp.lt.s32.totalorder %v1616_v11, 111  ;;  %s2306_s10 = smov (!%p329_p4, %s1522_s10), 1 }
  0x10   : > { %v1566_v7 = vmax.f32 %v1563_v6, 0.0  ;;  %vm515_vm2 = vcmp.lt.s32.totalorder %v1616_v11, 113  ;;  %vm547_vm3 = vcmp.lt.s32.totalorder %v1616_v11, 112  ;;  %v588_v49 = vperm.slane %v1408_v12, 1 }
  0x11   : > { %577 = vrot.lane.b32.xlu1 %v1537_v3, %s1457_s16  ;;  %511 = vrot.lane.b32.xlu2 %v1540_v4, %s1458_s17  ;;  %v1670_v56 = vld [vmem:[%s2294_s1 + $0x5] ss:$8 sm:$0xf]  ;;  %vm483_vm4 = vcmp.lt.s32.totalorder %v1616_v11, 127  ;;  %vm415_vm5 = vcmp.lt.s32.totalorder %v1616_v11, 15  ;;  %vm447_vm6 = vcmp.lt.s32.totalorder %v1616_v11, 1 }
  0x12   : > { %571 = vrot.lane.b32.xlu0 %v1543_v5, %s1457_s16  ;;  %v493_v61 = vperm.slane %v1670_v56, 2  ;;  %v494_v62 = vperm.slane %v1670_v56, 3  ;;  %vm352_vm7 = vcmp.lt.s32.totalorder %v1616_v11, 17  ;;  %vm383_vm8 = vcmp.lt.s32.totalorder %v1616_v11, 16 }
  0x13   : > { %vm1124_vm10 = vcmask 64512  }
  0x19   : > { %513 = vrot.lane.b32.xlu2 %v1537_v3, %s1458_s17  ;;  %507 = vrot.lane.b32.xlu1 %v1543_v5, %s1458_s17 }
  0x1a   : > { %575 = vrot.lane.b32.xlu0 %v1540_v4, %s1457_s16 }
  0x21   : > { %545 = vrot.lane.b32.xlu2 %v1537_v3, %s1459_s18  ;;  %543 = vrot.lane.b32.xlu1 %v1540_v4, %s1459_s18 }
  0x22   : > { %539 = vrot.lane.b32.xlu0 %v1543_v5, %s1459_s18 }
  0x29   : > { %479 = vrot.lane.b32.xlu2 %v1540_v4, %s1460_s19  ;;  %475 = vrot.lane.b32.xlu1 %v1543_v5, %s1460_s19 }
  0x2a   : > { %573 = vrot.lane.b32.xlu0 %v1566_v7, %s1457_s16 }
  0x31   : > { %411 = vrot.lane.b32.xlu2 %v1540_v4, %s1461_s20  ;;  %409 = vrot.lane.b32.xlu1 %v1566_v7, %s1461_s20 }
  0x32   : > { %481 = vrot.lane.b32.xlu0 %v1537_v3, %s1460_s19 }
  0x39   : > { %443 = vrot.lane.b32.xlu2 %v1540_v4, %s1462_s21  ;;  %441 = vrot.lane.b32.xlu1 %v1566_v7, %s1462_s21 }
  0x3a   : > { %413 = vrot.lane.b32.xlu0 %v1537_v3, %s1461_s20 }
  0x41   : > { %541 = vrot.lane.b32.xlu2 %v1566_v7, %s1459_s18  ;;  %509 = vrot.lane.b32.xlu1 %v1566_v7, %s1458_s17 }
  0x42   : > { %445 = vrot.lane.b32.xlu0 %v1537_v3, %s1462_s21 }
  0x49   : > { %348 = vrot.lane.b32.xlu2 %v1537_v3, %s1463_s22  ;;  %346 = vrot.lane.b32.xlu1 %v1540_v4, %s1463_s22 }
  0x4a   : > { %344 = vrot.lane.b32.xlu0 %v1566_v7, %s1463_s22 }
  0x51   : > { %381 = vrot.lane.b32.xlu2 %v1537_v3, %s1464_s23  ;;  %379 = vrot.lane.b32.xlu1 %v1540_v4, %s1464_s23 }
  0x52   : > { %377 = vrot.lane.b32.xlu0 %v1566_v7, %s1464_s23 }
  0x59   : > { %439 = vrot.lane.b32.xlu2 %v1543_v5, %s1462_s21  ;;  %407 = vrot.lane.b32.xlu1 %v1543_v5, %s1461_s20 }
  0x5a   : > { %477 = vrot.lane.b32.xlu0 %v1566_v7, %s1460_s19 }
  0x61   : > { %375 = vrot.lane.b32.xlu1 %v1543_v5, %s1464_s23 }
  0x62   : > { %342 = vrot.lane.b32.xlu0 %v1543_v5, %s1463_s22 }
  0x6b   : > { %v1614_v8 = vpop.permute.xlu2 %511 }
  0x73   : > { %v514_v10 = vpop.permute.xlu2 %513 }
  0x74   : > { %v516_v32 = vsel %vm515_vm2, %v1614_v8, %v514_v10 }
  0x75   : > { %v533_v40 = vmul.f32 %v525_v30, %v516_v32  ;;  %v555_v32 = vperm.slane %v1637_v27, 0 }
  0x7b   : > { %v546_v17 = vpop.permute.xlu2 %545 }
  0x83   : > { %v578_v14 = vpop.permute.xlu1 %577  ;;  %v1640_v28 = vpop.permute.xlu2 %479 }
  0x84   : > { %v572_v15 = vpop.permute.xlu0 %571 }
  0x85   : > { %v583_v16 = vsel %vm579_vm0, %v578_v14, %v572_v15 }
  0x86   : > { %v598_v18 = vmul.f32 %v590_v13, %v583_v16 }
  0x88   : > { %v658_v19 = vpack.c.bf16 %v598_v18, %v598_v18 }
  0x8a   : > { %v681_v20 = vsel %vm670_vm1, %v658_v19, 0 }
  0x8b   : > { %725 = vmatpush.bf16.msra.mxu3 %v681_v20  ;;  %v1625_v22 = vpop.permute.xlu1 %507  ;;  %v412_v47 = vpop.permute.xlu2 %411 }
  0x8c   : > { %v576_v23 = vpop.permute.xlu0 %575  ;;  %v519_v36 = vsel %vm515_vm2, %v514_v10, %v1625_v22 }
  0x8d   : > { %v580_v24 = vsel %vm579_vm0, %v576_v23, %v578_v14  ;;  %v534_v43 = vmul.f32 %v526_v33, %v519_v36  ;;  %v1688_v14 = vld [vmem:[%s2294_s1 + $0x2] ss:$8 sm:$0xf]  ;;  %v556_v33 = vperm.slane %v1637_v27, 1  ;;  %v524_v36 = vperm.slane %v1632_v25, 1 }
  0x8e   : > { %v597_v26 = vmul.f32 %v589_v21, %v580_v24  ;;  %v425_v20 = vperm.slane %v1688_v14, 2 }
  0x90   : > { %v657_v29 = vpack.c.bf16 %v597_v26, %v597_v26 }
  0x92   : > { %v678_v34 = vsel %vm670_vm1, %v657_v29, 0 }
  0x93   : > { %712 = vmatpush.bf16.msra.mxu2 %v678_v34  ;;  %v1654_v37 = vpop.permute.xlu1 %543  ;;  %v444_v9 = vpop.permute.xlu2 %443 }
  0x94   : > { %v548_v38 = vsel %vm547_vm3, %v1654_v37, %v546_v17  ;;  %v540_v39 = vpop.permute.xlu0 %539 }
  0x95   : > { %v565_v41 = vmul.f32 %v557_v31, %v548_v38  ;;  %v551_v42 = vsel %vm547_vm3, %v546_v17, %v540_v39  ;;  %v1693_v17 = vld [vmem:[%s2294_s1 + $0x3] ss:$8 sm:$0xf] }
  0x96   : > { %v566_v44 = vmul.f32 %v558_v35, %v551_v42  ;;  %v457_v21 = vperm.slane %v1693_v17, 2  ;;  %v523_v35 = vperm.slane %v1632_v25, 0 }
  0x97   : > { %v653_v45 = vpack.c.bf16 %v565_v41, %v533_v40  ;;  %v426_v40 = vperm.slane %v1688_v14, 3  ;;  %v458_v41 = vperm.slane %v1693_v17, 3 }
  0x98   : > { %v654_v46 = vpack.c.bf16 %v566_v44, %v534_v43 }
  0x99   : > { %713 = vmatpush.bf16.msra.mxu2 %v653_v45 }
  0x9a   : > { %726 = vmatpush.bf16.msra.mxu3 %v654_v46 }
  0x9b   : > { %v1661_v50 = vpop.permute.xlu1 %475  ;;  %v542_v30 = vpop.permute.xlu2 %541 }
  0x9c   : > { %v574_v51 = vpop.permute.xlu0 %573  ;;  %v550_v34 = vsel %vm547_vm3, %v540_v39, %v542_v30  ;;  %v549_v38 = vsel %vm547_vm3, %v542_v30, %v1654_v37  ;;  %v659_v30 = vld [vmem:[%s2295_s2] sm:$0xf] }
  0x9d   : > { %v581_v52 = vsel %vm579_vm0, %v574_v51, %v576_v23  ;;  %v582_v53 = vsel %vm579_vm0, %v572_v15, %v574_v51  ;;  %v563_v43 = vmul.f32 %v555_v32, %v550_v34  ;;  %v564_v37 = vmul.f32 %v556_v33, %v549_v38 }
  0x9e   : > { %v595_v54 = vmul.f32 %v587_v48, %v582_v53  ;;  %v596_v55 = vmul.f32 %v588_v49, %v581_v52  ;;  %v492_v32 = vperm.slane %v1670_v56, 1 }
  0xa0   : > { %v655_v57 = vpack.c.bf16 %v595_v54, %v595_v54  ;;  %v656_v58 = vpack.c.bf16 %v596_v55, %v596_v55  ;;  %v660_v55 = vld [vmem:[%s2296_s3] sm:$0xff] }
  0xa2   : > { %v672_v59 = vsel %vm670_vm1, %v655_v57, 0  ;;  %v675_v60 = vsel %vm670_vm1, %v656_v58, 0  ;;  %v1746_v57 = vld [vmem:[%s2294_s1] ss:$8 sm:$0xf] }
  0xa3   : > { %686 = vmatpush.bf16.msra.mxu0 %v672_v59  ;;  %699 = vmatpush.bf16.msra.mxu1 %v675_v60  ;;  %v1677_v63 = vpop.permute.xlu1 %409  ;;  %v1736_v53 = vpop.permute.xlu2 %348  ;;  %v1751_v58 = vld [vmem:[%s2294_s1 + $0x1] ss:$8 sm:$0xf]  ;;  %v1465_v59 = vmov 0   ;;  %v362_v60 = vperm.slane %v1746_v57, 3 }
  0xa4   : > { %v482_v10 = vpop.permute.xlu0 %481  ;;  %v417_v23 = vsel %vm415_vm5, %v1677_v63, %v412_v47  ;;  %1447 = vset.pattern.permute.xlu2 %v1465_v59  ;;  %1448 = vset.pattern.permute.xlu0 %v1465_v59 }
  0xa5   : > { %v484_v12 = vsel %vm483_vm4, %v1640_v28, %v482_v10  ;;  %v487_v13 = vsel %vm483_vm4, %v482_v10, %v1661_v50  ;;  %663 = vperm.xlu2 %1447, %v660_v55   ;;  %v361_v10 = vperm.slane %v1746_v57, 2 }
  0xa6   : > { %v501_v15 = vmul.f32 %v493_v61, %v484_v12  ;;  %v502_v16 = vmul.f32 %v494_v62, %v487_v13  ;;  %v394_v61 = vperm.slane %v1751_v58, 3  ;;  %v393_v12 = vperm.slane %v1751_v58, 2 }
  0xa8   : > { %v649_v18 = vpack.c.bf16 %v501_v15, %v1540_v4  ;;  %v650_v19 = vpack.c.bf16 %v502_v16, %v1537_v3  ;;  %v433_v3 = vmul.f32 %v425_v20, %v417_v23 }
  0xaa   : > { %714 = vmatpush.bf16.msra.mxu2 %v649_v18  ;;  %727 = vmatpush.bf16.msra.mxu3 %v650_v19 }
  0xab   : > { %v1704_v24 = vpop.permute.xlu1 %441  ;;  %v382_v62 = vpop.permute.xlu2 %381 }
  0xac   : > { %v449_v4 = vsel %vm447_vm6, %v1704_v24, %v444_v9  ;;  %v1709_v26 = vpop.permute.xlu0 %413 }
  0xad   : > { %v465_v29 = vmul.f32 %v457_v21, %v449_v4  ;;  %v416_v27 = vsel %vm415_vm5, %v412_v47, %v1709_v26 }
  0xae   : > { %v434_v47 = vmul.f32 %v426_v40, %v416_v27 }
  0xaf   : > { %v645_v31 = vpack.c.bf16 %v465_v29, %v433_v3 }
  0xb1   : > { %715 = vmatpush.bf16.msra.mxu2 %v645_v31  ;;  %v491_v31 = vperm.slane %v1670_v56, 0 }
  0xb3   : > { %v510_v42 = vpop.permute.xlu1 %509  ;;  %v440_v34 = vpop.permute.xlu2 %439 }
  0xb4   : > { %v517_v39 = vsel %vm515_vm2, %v510_v42, %v1614_v8  ;;  %v518_v25 = vsel %vm515_vm2, %v1625_v22, %v510_v42  ;;  %v1731_v44 = vpop.permute.xlu0 %445  ;;  %v455_v42 = vperm.slane %v1693_v17, 0 }
  0xb5   : > { %v531_v45 = vmul.f32 %v523_v35, %v518_v25  ;;  %v532_v46 = vmul.f32 %v524_v36, %v517_v39  ;;  %v448_v48 = vsel %vm447_vm6, %v444_v9, %v1731_v44  ;;  %v423_v35 = vperm.slane %v1688_v14, 0 }
  0xb6   : > { %v466_v49 = vmul.f32 %v458_v41, %v448_v48  ;;  %v424_v36 = vperm.slane %v1688_v14, 1  ;;  %v456_v14 = vperm.slane %v1693_v17, 1  ;;  %v392_v17 = vperm.slane %v1751_v58, 1 }
  0xb7   : > { %v651_v51 = vpack.c.bf16 %v563_v43, %v531_v45  ;;  %v652_v52 = vpack.c.bf16 %v564_v37, %v532_v46  ;;  %v391_v45 = vperm.slane %v1751_v58, 0 }
  0xb8   : > { %v646_v8 = vpack.c.bf16 %v466_v49, %v434_v47  ;;  %v360_v47 = vperm.slane %v1746_v57, 1 }
  0xb9   : > { %687 = vmatpush.bf16.msra.mxu0 %v651_v51  ;;  %700 = vmatpush.bf16.msra.mxu1 %v652_v52 }
  0xba   : > { %728 = vmatpush.bf16.msra.mxu3 %v646_v8 }
  0xbb   : > { %v347_v22 = vpop.permute.xlu1 %346 }
  0xbc   : > { %v1738_v54 = vpop.permute.xlu0 %344  ;;  %v353_v9 = vsel %vm352_vm7, %v347_v22, %v1736_v53 }
  0xbd   : > { %v354_v13 = vsel %vm352_vm7, %v1738_v54, %v347_v22  ;;  %v370_v19 = vmul.f32 %v362_v60, %v353_v9 }
  0xbe   : > { %v369_v23 = vmul.f32 %v361_v10, %v354_v13 }
  0xc3   : > { %v380_v15 = vpop.permute.xlu1 %379 }
  0xc4   : > { %v384_v16 = vsel %vm383_vm8, %v380_v15, %v382_v62  ;;  %v378_v18 = vpop.permute.xlu0 %377 }
  0xc5   : > { %v402_v20 = vmul.f32 %v394_v61, %v384_v16  ;;  %v385_v21 = vsel %vm383_vm8, %v378_v18, %v380_v15 }
  0xc6   : > { %v401_v4 = vmul.f32 %v393_v12, %v385_v21 }
  0xc7   : > { %v642_v3 = vpack.c.bf16 %v402_v20, %v370_v19 }
  0xc8   : > { %v641_v29 = vpack.c.bf16 %v401_v4, %v369_v23 }
  0xc9   : > { %729 = vmatpush.bf16.msra.mxu3 %v642_v3 }
  0xca   : > { %716 = vmatpush.bf16.msra.mxu2 %v641_v29 }
  0xcb   : > { %v408_v33 = vpop.permute.xlu1 %407 }
  0xcc   : > { %v478_v38 = vpop.permute.xlu0 %477  ;;  %1412 = vmatmul.msk.bf16.vlgmr.msra.gmra.mxu3 %vm666_vm9, %v659_v30  ;;  %v418_v40 = vsel %vm415_vm5, %v408_v33, %v1677_v63  ;;  %v419_v41 = vsel %vm415_vm5, %v1709_v26, %v408_v33  ;;  %v450_v26 = vsel %vm447_vm6, %v440_v34, %v1704_v24  ;;  %v359_v24 = vperm.slane %v1746_v57, 0  ;;  %v1419_v33 = vld [vmem:[%s2294_s1 + $0x20] ss:$8 sm:$0xf] }
  0xcd   : > { %v485_v56 = vsel %vm483_vm4, %v478_v38, %v1640_v28  ;;  %v486_v27 = vsel %vm483_vm4, %v1661_v50, %v478_v38  ;;  %1411 = vmatmul.msk.bf16.vlgmr.msra.gmra.mxu2 %vm666_vm9, %v659_v30  ;;  %v451_v28 = vsel %vm447_vm6, %v1731_v44, %v440_v34  ;;  %v431_v39 = vmul.f32 %v423_v35, %v419_v41 }
  0xce   : > { %v499_v43 = vmul.f32 %v491_v31, %v486_v27  ;;  %v500_v63 = vmul.f32 %v492_v32, %v485_v56  ;;  %v432_v25 = vmul.f32 %v424_v36, %v418_v40  ;;  %v464_v46 = vmul.f32 %v456_v14, %v450_v26  ;;  %v1418_v26 = vld [vmem:[%s2294_s1 + $0x7] ss:$8 sm:$0xf] }
  0xcf   : > { %v463_v48 = vmul.f32 %v455_v42, %v451_v28  ;;  %v967_v34 = vperm.slane %v1419_v33, 0  ;;  %v1417_v28 = vld [vmem:[%s2294_s1 + $0x6] ss:$8 sm:$0xf] }
  0xd0   : > { %v647_v50 = vpack.c.bf16 %v499_v43, %v1543_v5  ;;  %v648_v37 = vpack.c.bf16 %v500_v63, %v1566_v7  ;;  %v644_v52 = vpack.c.bf16 %v464_v46, %v432_v25  ;;  %v907_v25 = vperm.slane %v1417_v28, 0 }
  0xd1   : > { %v643_v51 = vpack.c.bf16 %v463_v48, %v431_v39  ;;  %v937_v39 = vperm.slane %v1418_v26, 0 }
  0xd2   : > { %688 = vmatpush.bf16.msra.mxu0 %v647_v50  ;;  %701 = vmatpush.bf16.msra.mxu1 %v648_v37 }
  0xd3   : > { %v376_v49 = vpop.permute.xlu1 %375 }
  0xd4   : > { %v386_v44 = vsel %vm383_vm8, %v376_v49, %v378_v18  ;;  %v387_v5 = vsel %vm383_vm8, %v382_v62, %v376_v49  ;;  %v343_v7 = vpop.permute.xlu0 %342  ;;  %v968_v49 = vperm.slane %v1419_v33, 1 }
  0xd5   : > { %v399_v8 = vmul.f32 %v391_v45, %v387_v5  ;;  %v400_v22 = vmul.f32 %v392_v17, %v386_v44  ;;  %v355_v55 = vsel %vm352_vm7, %v343_v7, %v1738_v54  ;;  %v356_v57 = vsel %vm352_vm7, %v1736_v53, %v343_v7 }
  0xd6   : > { %v367_v58 = vmul.f32 %v359_v24, %v356_v57  ;;  %v368_v59 = vmul.f32 %v360_v47, %v355_v55  ;;  %689 = vmatpush.bf16.msra.mxu0 %v643_v51  ;;  %702 = vmatpush.bf16.msra.mxu1 %v644_v52  ;;  %v969_v44 = vperm.slane %v1419_v33, 2  ;;  %v970_v5 = vperm.slane %v1419_v33, 3 }
  0xd7   : > { %v910_v33 = vperm.slane %v1417_v28, 3 }
  0xd8   : > { %v639_v60 = vpack.c.bf16 %v399_v8, %v367_v58  ;;  %v640_v61 = vpack.c.bf16 %v400_v22, %v368_v59 }
  0xda   : > { %690 = vmatpush.bf16.msra.mxu0 %v639_v60  ;;  %703 = vmatpush.bf16.msra.mxu1 %v640_v61 }
  0xdd   : > { %1409 = vmatmul.msk.bf16.vlgmr.msra.gmra.mxu0 %vm666_vm9, %v659_v30  ;;  %1410 = vmatmul.msk.bf16.vlgmr.msra.gmra.mxu1 %vm666_vm9, %v659_v30  ;;  %v1040_v30 = vld [vmem:[%s2298_s5] sm:$0xff] }
  0xff   : > { %v664_v54 = vpop.permute.xlu2 %663 }
 0x14f   : > { %v731_v62 = vpop.f32.mrf.mxu3 }
 0x150   : > { %v718_v9 = vpop.f32.mrf.mxu2  ;;  %v732_v4 = vadd.f32 %v731_v62, %v664_v54  ;;  %v938_v62 = vperm.slane %v1418_v26, 1 }
 0x151   : > { %v719_v23 = vadd.f32 %v718_v9, %v664_v54 }
 0x152   : > { %v1840_v29 = vmax.f32 %v732_v4, 0.0 }
 0x153   : > { %v1838_v3 = vmax.f32 %v719_v23, 0.0 }
 0x157   : > { %v733_v10 = vpop.f32.mrf.mxu3 }
 0x158   : > { %v720_v12 = vpop.f32.mrf.mxu2 }
 0x15a   : > { %v692_v13 = vpop.f32.mrf.mxu0  ;;  %v705_v15 = vpop.f32.mrf.mxu1 }
 0x15b   : > { %v693_v53 = vadd.f32 %v692_v13, %v664_v54  ;;  %v706_v18 = vadd.f32 %v705_v15, %v664_v54  ;;  %v908_v13 = vperm.slane %v1417_v28, 1 }
 0x15d   : > { %v1816_v16 = vmax.f32 %v693_v53, 0.0  ;;  %v1824_v21 = vmax.f32 %v706_v18, 0.0 }
 0x15f   : > { %863 = vrot.lane.b32.xlu0 %v1816_v16, %s1460_s19  ;;  %893 = vrot.lane.b32.xlu1 %v1816_v16, %s1458_s17 }
 0x160   : > { %953 = vrot.lane.b32.xlu2 %v1816_v16, %s1457_s16 }
 0x162   : > { %v694_v19 = vpop.f32.mrf.mxu0  ;;  %v707_v20 = vpop.f32.mrf.mxu1 }
 0x167   : > { %831 = vrot.lane.b32.xlu0 %v1824_v21, %s1462_s21  ;;  %801 = vrot.lane.b32.xlu1 %v1824_v21, %s1461_s20 }
 0x168   : > { %923 = vrot.lane.b32.xlu2 %v1816_v16, %s1459_s18 }
 0x16f   : > { %741 = vrot.lane.b32.xlu0 %v1824_v21, %s1463_s22  ;;  %895 = vrot.lane.b32.xlu1 %v1824_v21, %s1458_s17 }
 0x170   : > { %955 = vrot.lane.b32.xlu2 %v1824_v21, %s1457_s16 }
 0x177   : > { %957 = vrot.lane.b32.xlu0 %v1838_v3, %s1457_s16  ;;  %959 = vrot.lane.b32.xlu1 %v1840_v29, %s1457_s16  ;;  %s1401_s16 = sshll.u32 %s2306_s10, 3 }
 0x178   : > { %925 = vrot.lane.b32.xlu2 %v1824_v21, %s1459_s18 }
 0x17f   : > { %897 = vrot.lane.b32.xlu0 %v1838_v3, %s1458_s17  ;;  %899 = vrot.lane.b32.xlu1 %v1840_v29, %s1458_s17 }
 0x180   : > { %771 = vrot.lane.b32.xlu2 %v1824_v21, %s1464_s23 }
 0x187   : > { %929 = vrot.lane.b32.xlu0 %v1840_v29, %s1459_s18  ;;  %869 = vrot.lane.b32.xlu1 %v1840_v29, %s1460_s19 }
 0x188   : > { %927 = vrot.lane.b32.xlu2 %v1838_v3, %s1459_s18 }
 0x18f   : > { %867 = vrot.lane.b32.xlu0 %v1838_v3, %s1460_s19  ;;  %833 = vrot.lane.b32.xlu1 %v1838_v3, %s1462_s21 }
 0x190   : > { %803 = vrot.lane.b32.xlu2 %v1838_v3, %s1461_s20 }
 0x197   : > { %835 = vrot.lane.b32.xlu0 %v1840_v29, %s1462_s21  ;;  %743 = vrot.lane.b32.xlu1 %v1838_v3, %s1463_s22 }
 0x198   : > { %805 = vrot.lane.b32.xlu2 %v1840_v29, %s1461_s20 }
 0x19f   : > { %773 = vrot.lane.b32.xlu0 %v1838_v3, %s1464_s23  ;;  %799 = vrot.lane.b32.xlu1 %v1816_v16, %s1461_s20 }
 0x1a0   : > { %775 = vrot.lane.b32.xlu2 %v1840_v29, %s1464_s23 }
 0x1a7   : > { %865 = vrot.lane.b32.xlu0 %v1824_v21, %s1460_s19  ;;  %745 = vrot.lane.b32.xlu1 %v1840_v29, %s1463_s22  ;;  %s332_s19 = scalar_lea.vmem %s2302_s9, %s1401_s16 }
 0x1a8   : > { %829 = vrot.lane.b32.xlu2 %v1816_v16, %s1462_s21 }
 0x1af   : > { %739 = vrot.lane.b32.xlu0 %v1816_v16, %s1463_s22  ;;  %769 = vrot.lane.b32.xlu1 %v1816_v16, %s1464_s23 }
 0x1b0   : > { %1043 = vperm.xlu2 %1447, %v1040_v30   ;;  %v1936_v30 = vld [vmem:[%s2294_s1 + $0x5] ss:$8 sm:$0xf] }
 0x1ba   : > { %v954_v31 = vpop.permute.xlu2 %953 }
 0x1c2   : > { %v1891_v32 = vpop.permute.xlu2 %923 }
 0x1ca   : > { %v956_v35 = vpop.permute.xlu2 %955 }
 0x1cb   : > { %v963_v36 = vsel %vm579_vm0, %v954_v31, %v956_v35 }
 0x1cc   : > { %v975_v38 = vmul.f32 %v967_v34, %v963_v36  ;;  %v939_v34 = vperm.slane %v1418_v26, 2 }
 0x1ce   : > { %v1035_v40 = vpack.c.bf16 %v975_v38, %v975_v38 }
 0x1d0   : > { %v1050_v41 = vsel %vm670_vm1, %v1035_v40, 0 }
 0x1d1   : > { %1064 = vmatpush.bf16.msrb.mxu0 %v1050_v41  ;;  %v1899_v56 = vpop.permute.xlu0 %863  ;;  %v894_v27 = vpop.permute.xlu1 %893 }
 0x1d2   : > { %v926_v14 = vpop.permute.xlu2 %925 }
 0x1d3   : > { %v933_v50 = vsel %vm547_vm3, %v1891_v32, %v926_v14 }
 0x1d4   : > { %v945_v46 = vmul.f32 %v937_v39, %v933_v50 }
 0x1d9   : > { %v1901_v42 = vpop.permute.xlu0 %831  ;;  %v1903_v43 = vpop.permute.xlu1 %801 }
 0x1da   : > { %v1905_v63 = vpop.permute.xlu2 %771 }
 0x1e1   : > { %v1916_v37 = vpop.permute.xlu0 %741  ;;  %v896_v45 = vpop.permute.xlu1 %895 }
 0x1e2   : > { %v903_v17 = vsel %vm515_vm2, %v894_v27, %v896_v45  ;;  %v928_v24 = vpop.permute.xlu2 %927 }
 0x1e3   : > { %v915_v48 = vmul.f32 %v907_v25, %v903_v17  ;;  %v932_v15 = vsel %vm547_vm3, %v926_v14, %v928_v24  ;;  %v880_v14 = vperm.slane %v1936_v30, 3 }
 0x1e4   : > { %v946_v20 = vmul.f32 %v938_v62, %v932_v15 }
 0x1e5   : > { %v1031_v47 = vpack.c.bf16 %v945_v46, %v915_v48 }
 0x1e7   : > { %1065 = vmatpush.bf16.msrb.mxu0 %v1031_v47 }
 0x1e9   : > { %v958_v7 = vpop.permute.xlu0 %957  ;;  %v960_v51 = vpop.permute.xlu1 %959 }
 0x1ea   : > { %v962_v52 = vsel %vm579_vm0, %v956_v35, %v958_v7  ;;  %v961_v8 = vsel %vm579_vm0, %v958_v7, %v960_v51  ;;  %v964_v22 = vsel %vm579_vm0, %v960_v51, %v954_v31  ;;  %v804_v9 = vpop.permute.xlu2 %803  ;;  %v909_v31 = vperm.slane %v1417_v28, 2 }
 0x1eb   : > { %v976_v55 = vmul.f32 %v968_v49, %v962_v52  ;;  %v977_v57 = vmul.f32 %v969_v44, %v961_v8  ;;  %v978_v58 = vmul.f32 %v970_v5, %v964_v22  ;;  %v940_v35 = vperm.slane %v1418_v26, 3  ;;  %v1956_v49 = vld [vmem:[%s2294_s1 + $0x3] ss:$8 sm:$0xf] }
 0x1ec   : > { %v845_v5 = vperm.slane %v1956_v49, 2  ;;  %v846_v62 = vperm.slane %v1956_v49, 3 }
 0x1ed   : > { %v1036_v59 = vpack.c.bf16 %v976_v55, %v976_v55  ;;  %v1037_v60 = vpack.c.bf16 %v977_v57, %v977_v57  ;;  %v1038_v61 = vpack.c.bf16 %v978_v58, %v978_v58  ;;  %v808_v58 = vsel %vm415_vm5, %v1903_v43, %v804_v9 }
 0x1ef   : > { %v1053_v10 = vsel %vm670_vm1, %v1036_v59, 0  ;;  %v1056_v54 = vsel %vm670_vm1, %v1037_v60, 0  ;;  %v1059_v12 = vsel %vm670_vm1, %v1038_v61, 0 }
 0x1f0   : > { %1077 = vmatpush.bf16.msrb.mxu1 %v1053_v10  ;;  %1090 = vmatpush.bf16.msrb.mxu2 %v1056_v54 }
 0x1f1   : > { %1103 = vmatpush.bf16.msrb.mxu3 %v1059_v12  ;;  %v898_v53 = vpop.permute.xlu0 %897  ;;  %v900_v18 = vpop.permute.xlu1 %899 }
 0x1f2   : > { %v902_v19 = vsel %vm515_vm2, %v896_v45, %v898_v53  ;;  %v901_v36 = vsel %vm515_vm2, %v898_v53, %v900_v18  ;;  %v904_v38 = vsel %vm515_vm2, %v900_v18, %v894_v27  ;;  %v1942_v40 = vpop.permute.xlu2 %805 }
 0x1f3   : > { %v916_v23 = vmul.f32 %v908_v13, %v902_v19  ;;  %v917_v50 = vmul.f32 %v909_v31, %v901_v36  ;;  %v918_v45 = vmul.f32 %v910_v33, %v904_v38  ;;  %v807_v10 = vsel %vm415_vm5, %v804_v9, %v1942_v40  ;;  %v1996_v19 = vld [vmem:[%s2294_s1 + $0x1] ss:$8 sm:$0xf] }
 0x1f4   : > { %v785_v31 = vperm.slane %v1996_v19, 2 }
 0x1f5   : > { %v1032_v4 = vpack.c.bf16 %v946_v20, %v916_v23  ;;  %v844_v23 = vperm.slane %v1956_v49, 1 }
 0x1f7   : > { %1078 = vmatpush.bf16.msrb.mxu1 %v1032_v4 }
 0x1f9   : > { %v930_v41 = vpop.permute.xlu0 %929  ;;  %v870_v39 = vpop.permute.xlu1 %869 }
 0x1fa   : > { %v931_v25 = vsel %vm547_vm3, %v928_v24, %v930_v41  ;;  %v934_v28 = vsel %vm547_vm3, %v930_v41, %v1891_v32  ;;  %v874_v26 = vsel %vm483_vm4, %v870_v39, %v1899_v56  ;;  %v879_v32 = vperm.slane %v1936_v30, 2  ;;  %v1962_v24 = vld [vmem:[%s2294_s1 + $0x2] ss:$8 sm:$0xf]  ;;  %v1975_v55 = vpop.permute.xlu2 %775 }
 0x1fb   : > { %v947_v27 = vmul.f32 %v939_v34, %v931_v25  ;;  %v948_v17 = vmul.f32 %v940_v35, %v934_v28  ;;  %v888_v46 = vmul.f32 %v880_v14, %v874_v26  ;;  %v815_v22 = vperm.slane %v1962_v24, 2 }
 0x1fc   : > { %v816_v61 = vperm.slane %v1962_v24, 3  ;;  %v814_v33 = vperm.slane %v1962_v24, 1  ;;  %v1116_v41 = vpack.c.bf16 %v1532_v1, %v1532_v1 }
 0x1fd   : > { %v1033_v48 = vpack.c.bf16 %v947_v27, %v917_v50  ;;  %v1034_v47 = vpack.c.bf16 %v948_v17, %v918_v45  ;;  %v1030_v51 = vpack.c.bf16 %v888_v46, %v1840_v29  ;;  %v823_v60 = vmul.f32 %v815_v22, %v808_v58 }
 0x1fe   : > { %v824_v53 = vmul.f32 %v816_v61, %v807_v10  ;;  %v1135_v45 = vsel %vm670_vm1, %v1116_v41, 0  ;;  %v786_v27 = vperm.slane %v1996_v19, 3  ;;  %v877_v17 = vperm.slane %v1936_v30, 0  ;;  %v1241_v10 = vld [vmem:[%s2301_s8 + $0x168] sm:$0xff]  ;;  %v1113_v41 = vld [vmem:[%s2299_s6] sm:$0xf] }
 0x1ff   : > { %1091 = vmatpush.bf16.msrb.mxu2 %v1033_v48  ;;  %1104 = vmatpush.bf16.msrb.mxu3 %v1034_v47  ;;  %v878_v46 = vperm.slane %v1936_v30, 1  ;;  %v2030_v48 = vld [vmem:[%s2297_s4] sm:$0xf]  ;;  %v1117_v30 = vpack.c.bf16 %v1530_v0, %v1530_v0 }
 0x201   : > { %v1964_v44 = vpop.permute.xlu0 %867  ;;  %v834_v7 = vpop.permute.xlu1 %833 }
 0x202   : > { %v871_v52 = vsel %vm483_vm4, %v1964_v44, %v870_v39  ;;  %v838_v8 = vsel %vm447_vm6, %v1901_v42, %v834_v7  ;;  %v830_v9 = vpop.permute.xlu2 %829 }
 0x203   : > { %v887_v57 = vmul.f32 %v879_v32, %v871_v52  ;;  %1105 = vmatpush.bf16.msrb.mxu3 %v1030_v51  ;;  %v853_v59 = vmul.f32 %v845_v5, %v838_v8  ;;  %v839_v34 = vsel %vm447_vm6, %v830_v9, %v1901_v42  ;;  %v843_v32 = vperm.slane %v1956_v49, 0 }
 0x204   : > { %v2016_v25 = vmul.f32 %v844_v23, %v839_v34  ;;  %v813_v5 = vperm.slane %v1962_v24, 0  ;;  %v1114_v23 = vpack.c.bf16 %v1534_v2, %v1534_v2  ;;  %v1239_v2 = vld [vmem:[%s2301_s8 + $0x158] sm:$0xff] }
 0x205   : > { %v1029_v29 = vpack.c.bf16 %v887_v57, %v1838_v3  ;;  %v1025_v13 = vpack.c.bf16 %v853_v59, %v823_v60  ;;  %v1991_v3 = vld [vmem:[%s2294_s1] ss:$8 sm:$0xf] }
 0x206   : > { %v755_v4 = vperm.slane %v1991_v3, 2 }
 0x207   : > { %1092 = vmatpush.bf16.msrb.mxu2 %v1029_v29 }
 0x209   : > { %v836_v54 = vpop.permute.xlu0 %835  ;;  %v744_v12 = vpop.permute.xlu1 %743 }
 0x20a   : > { %v837_v15 = vsel %vm447_vm6, %v834_v7, %v836_v54  ;;  %v748_v35 = vsel %vm352_vm7, %v1916_v37, %v744_v12  ;;  %v840_v59 = vsel %vm447_vm6, %v836_v54, %v830_v9  ;;  %v754_v54 = vperm.slane %v1991_v3, 1 }
 0x20b   : > { %v854_v18 = vmul.f32 %v846_v62, %v837_v15  ;;  %1093 = vmatpush.bf16.msrb.mxu2 %v1025_v13  ;;  %v763_v42 = vmul.f32 %v755_v4, %v748_v35  ;;  %v1138_v13 = vsel %vm670_vm1, %v1117_v30, 0  ;;  %v851_v15 = vmul.f32 %v843_v32, %v840_v59  ;;  %v1255_v32 = vld [vmem:[%s2301_s8 + $0x1d8] sm:$0xff]  ;;  %v1254_v30 = vld [vmem:[%s2301_s8 + $0x1d0] sm:$0xff] }
 0x20c   : > { %v1251_v59 = vld [vmem:[%s2301_s8 + $0x1b8] sm:$0xff] }
 0x20d   : > { %v1026_v20 = vpack.c.bf16 %v854_v18, %v824_v53  ;;  %v783_v53 = vperm.slane %v1996_v19, 0 }
 0x20f   : > { %1106 = vmatpush.bf16.msrb.mxu3 %v1026_v20 }
 0x211   : > { %v774_v36 = vpop.permute.xlu0 %773  ;;  %v800_v38 = vpop.permute.xlu1 %799 }
 0x212   : > { %v778_v14 = vsel %vm383_vm8, %v1905_v63, %v774_v36  ;;  %v809_v39 = vsel %vm415_vm5, %v800_v38, %v1903_v43  ;;  %v756_v43 = vperm.slane %v1991_v3, 3  ;;  %v777_v47 = vsel %vm383_vm8, %v774_v36, %v1975_v55 }
 0x213   : > { %v793_v28 = vmul.f32 %v785_v31, %v778_v14  ;;  %v2018_v26 = vmul.f32 %v814_v33, %v809_v39  ;;  %v810_v52 = vsel %vm415_vm5, %v1942_v40, %v800_v38  ;;  %v794_v24 = vmul.f32 %v786_v27, %v777_v47  ;;  %v1118_v40 = vld [vmem:[%s2300_s7] sm:$0xff]  ;;  %v1211_v14 = vld [vmem:[%s2301_s8 + $0x78] sm:$0xff]  ;;  %v1225_v27 = vld [vmem:[%s2301_s8 + $0xe8] sm:$0xff] }
 0x214   : > { %1121 = vperm.xlu0 %1448, %v1118_v40   ;;  %v821_v29 = vmul.f32 %v813_v5, %v810_v52  ;;  %v1227_v39 = vld [vmem:[%s2301_s8 + $0xf8] sm:$0xff]  ;;  %v1206_v52 = vld [vmem:[%s2301_s8 + $0x50] sm:$0xff]  ;;  %v1204_v40 = vld [vmem:[%s2301_s8 + $0x40] sm:$0xff] }
 0x215   : > { %v1021_v50 = vpack.c.bf16 %v793_v28, %v763_v42  ;;  %v1024_v1 = vpack.c.bf16 %v2016_v25, %v2018_v26  ;;  %v1238_v25 = vld [vmem:[%s2301_s8 + $0x150] sm:$0xff]  ;;  %v1235_v47 = vld [vmem:[%s2301_s8 + $0x138] sm:$0xff] }
 0x216   : > { %v1023_v20 = vpack.c.bf16 %v851_v15, %v821_v29  ;;  %v1258_v42 = vld [vmem:[%s2301_s8 + $0x1f0] sm:$0xff]  ;;  %v1207_v5 = vld [vmem:[%s2301_s8 + $0x58] sm:$0xff]  ;;  %v1249_v15 = vld [vmem:[%s2301_s8 + $0x1a8] sm:$0xff] }
 0x217   : > { %1094 = vmatpush.bf16.msrb.mxu2 %v1021_v50  ;;  %v1210_v28 = vld [vmem:[%s2301_s8 + $0x70] sm:$0xff]  ;;  %v1237_v50 = vld [vmem:[%s2301_s8 + $0x148] sm:$0xff]  ;;  %v1203_v29 = vld [vmem:[%s2301_s8 + $0x38] sm:$0xff] }
 0x218   : > { %v1226_v26 = vld [vmem:[%s2301_s8 + $0xf0] sm:$0xff] }
 0x219   : > { %v866_v7 = vpop.permute.xlu0 %865  ;;  %v746_v51 = vpop.permute.xlu1 %745 }
 0x21a   : > { %v872_v8 = vsel %vm483_vm4, %v866_v7, %v1964_v44  ;;  %v873_v22 = vsel %vm483_vm4, %v1899_v56, %v866_v7  ;;  %v747_v49 = vsel %vm352_vm7, %v744_v12, %v746_v51  ;;  %1422 = vmatmul.msk.bf16.vlgmr.msrb.gmra.mxu2 %vm666_vm9, %v2030_v48  ;;  %v1243_v44 = vld [vmem:[%s2301_s8 + $0x178] sm:$0xff]  ;;  %v1242_v56 = vld [vmem:[%s2301_s8 + $0x170] sm:$0xff]  ;;  %v753_v12 = vperm.slane %v1991_v3, 0 }
 0x21b   : > { %1173 = vmatpush.bf16.msra.mxu2 %v1135_v45  ;;  %v885_v0 = vmul.f32 %v877_v17, %v873_v22  ;;  %v886_v57 = vmul.f32 %v878_v46, %v872_v8  ;;  %v764_v58 = vmul.f32 %v756_v43, %v747_v49  ;;  %v1115_v3 = vpack.c.bf16 %v1563_v6, %v1563_v6  ;;  %v1259_v6 = vld [vmem:[%s2301_s8 + $0x1f8] sm:$0xff]  ;;  %v1257_v45 = vld [vmem:[%s2301_s8 + $0x1e8] sm:$0xff]  ;;  %v1236_v17 = vld [vmem:[%s2301_s8 + $0x140] sm:$0xff] }
 0x21c   : > { %v1256_v46 = vld [vmem:[%s2301_s8 + $0x1e0] sm:$0xff]  ;;  %v1223_v7 = vld [vmem:[%s2301_s8 + $0xd8] sm:$0xff]  ;;  %v1222_v8 = vld [vmem:[%s2301_s8 + $0xd0] sm:$0xff] }
 0x21d   : > { %v1027_v60 = vpack.c.bf16 %v885_v0, %v1816_v16  ;;  %v1028_v61 = vpack.c.bf16 %v886_v57, %v1824_v21  ;;  %v1022_v62 = vpack.c.bf16 %v794_v24, %v764_v58  ;;  %v784_v16 = vperm.slane %v1996_v19, 1  ;;  %v1240_v21 = vld [vmem:[%s2301_s8 + $0x160] sm:$0xff]  ;;  %v1233_v22 = vld [vmem:[%s2301_s8 + $0x128] sm:$0xff] }
 0x21e   : > { %v1132_v38 = vsel %vm670_vm1, %v1115_v3, 0  ;;  %v1208_v43 = vld [vmem:[%s2301_s8 + $0x60] sm:$0xff]  ;;  %v1253_v49 = vld [vmem:[%s2301_s8 + $0x1c8] sm:$0xff]  ;;  %v1215_v3 = vld [vmem:[%s2301_s8 + $0x98] sm:$0xff] }
 0x21f   : > { %1300 = vmatpush.msrb.mxu2 %v1243_v44  ;;  %1066 = vmatpush.bf16.msrb.mxu0 %v1027_v60  ;;  %v1205_v24 = vld [vmem:[%s2301_s8 + $0x48] sm:$0xff]  ;;  %v1232_v57 = vld [vmem:[%s2301_s8 + $0x120] sm:$0xff]  ;;  %v1219_v60 = vld [vmem:[%s2301_s8 + $0xb8] sm:$0xff] }
 0x220   : > { %1079 = vmatpush.bf16.msrb.mxu1 %v1028_v61  ;;  %1107 = vmatpush.bf16.msrb.mxu3 %v1022_v62  ;;  %v1221_v0 = vld [vmem:[%s2301_s8 + $0xc8] sm:$0xff]  ;;  %v1252_v58 = vld [vmem:[%s2301_s8 + $0x1c0] sm:$0xff]  ;;  %v1230_v61 = vld [vmem:[%s2301_s8 + $0x110] sm:$0xff] }
 0x221   : > { %1301 = vmatpush.msrb.mxu2 %v1242_v56  ;;  %v740_v18 = vpop.permute.xlu0 %739  ;;  %v770_v9 = vpop.permute.xlu1 %769  ;;  %v1220_v44 = vld [vmem:[%s2301_s8 + $0xc0] sm:$0xff]  ;;  %v1231_v56 = vld [vmem:[%s2301_s8 + $0x118] sm:$0xff]  ;;  %v1250_v62 = vld [vmem:[%s2301_s8 + $0x1b0] sm:$0xff] }
 0x222   : > { %v749_v19 = vsel %vm352_vm7, %v740_v18, %v1916_v37  ;;  %v750_v4 = vsel %vm352_vm7, %v746_v51, %v740_v18  ;;  %v779_v31 = vsel %vm383_vm8, %v770_v9, %v1905_v63  ;;  %v780_v33 = vsel %vm383_vm8, %v1975_v55, %v770_v9  ;;  %v1234_v51 = vld [vmem:[%s2301_s8 + $0x130] sm:$0xff]  ;;  %v1200_v18 = vld [vmem:[%s2301_s8 + $0x20] sm:$0xff] }
 0x223   : > { %1302 = vmatpush.msrb.mxu2 %v1241_v10  ;;  %v761_v37 = vmul.f32 %v753_v12, %v750_v4  ;;  %v762_v34 = vmul.f32 %v754_v54, %v749_v19  ;;  %v791_v35 = vmul.f32 %v783_v53, %v780_v33  ;;  %v792_v36 = vmul.f32 %v784_v16, %v779_v31  ;;  %v1202_v10 = vld [vmem:[%s2301_s8 + $0x30] sm:$0xff]  ;;  %v1201_v54 = vld [vmem:[%s2301_s8 + $0x28] sm:$0xff]  ;;  %v1228_v16 = vld [vmem:[%s2301_s8 + $0x100] sm:$0xff] }
 0x224   : > { %1186 = vmatpush.bf16.msra.mxu3 %v1138_v13  ;;  %1067 = vmatpush.bf16.msrb.mxu0 %v1023_v20  ;;  %v1129_v55 = vsel %vm670_vm1, %v1114_v23, 0  ;;  %v1218_v12 = vld [vmem:[%s2301_s8 + $0xb0] sm:$0xff]  ;;  %v1229_v13 = vld [vmem:[%s2301_s8 + $0x108] sm:$0xff]  ;;  %v1216_v9 = vld [vmem:[%s2301_s8 + $0xa0] sm:$0xff] }
 0x225   : > { %1303 = vmatpush.msrb.mxu2 %v1240_v21  ;;  %1423 = vmatmul.msk.bf16.vlgmr.msrb.gmra.mxu3 %vm666_vm9, %v2030_v48  ;;  %v1019_v11 = vpack.c.bf16 %v791_v35, %v761_v37  ;;  %v1020_v63 = vpack.c.bf16 %v792_v36, %v762_v34  ;;  %v1217_v53 = vld [vmem:[%s2301_s8 + $0xa8] sm:$0xff]  ;;  %v1248_v21 = vld [vmem:[%s2301_s8 + $0x1a0] sm:$0xff]  ;;  %v1247_v20 = vld [vmem:[%s2301_s8 + $0x198] sm:$0xff] }
 0x226   : > { %1080 = vmatpush.bf16.msrb.mxu1 %v1024_v1  ;;  %v1209_v1 = vld [vmem:[%s2301_s8 + $0x68] sm:$0xff]  ;;  %v1199_v23 = vld [vmem:[%s2301_s8 + $0x18] sm:$0xff]  ;;  %v1246_v19 = vld [vmem:[%s2301_s8 + $0x190] sm:$0xff] }
 0x227   : > { %1304 = vmatpush.msrb.mxu2 %v1239_v2  ;;  %v1198_v4 = vld [vmem:[%s2301_s8 + $0x10] sm:$0xff]  ;;  %v1245_v33 = vld [vmem:[%s2301_s8 + $0x188] sm:$0xff]  ;;  %v1244_v37 = vld [vmem:[%s2301_s8 + $0x180] sm:$0xff] }
 0x228   : > { %1320 = vmatpush.msrb.mxu3 %v1259_v6  ;;  %1068 = vmatpush.bf16.msrb.mxu0 %v1019_v11  ;;  %v1214_v31 = vld [vmem:[%s2301_s8 + $0x90] sm:$0xff]  ;;  %v1197_v2 = vld [vmem:[%s2301_s8 + $0x8] sm:$0xff]  ;;  %v1196_v34 = vld [vmem:[%s2301_s8] sm:$0xff] }
 0x229   : > { %1305 = vmatpush.msrb.mxu2 %v1238_v25  ;;  %v1213_v6 = vld [vmem:[%s2301_s8 + $0x88] sm:$0xff]  ;;  %v1212_v35 = vld [vmem:[%s2301_s8 + $0x80] sm:$0xff] }
 0x22a   : > { %1081 = vmatpush.bf16.msrb.mxu1 %v1020_v63  ;;  %1426 = vmatmul.msk.bf16.vlgmr.msra.gmra.mxu2 %vm1124_vm10, %v1113_v41 }
 0x22b   : > { %1420 = vmatmul.msk.bf16.vlgmr.msrb.gmra.mxu0 %vm666_vm9, %v2030_v48  ;;  %1321 = vmatpush.msrb.mxu3 %v1258_v42 }
 0x22c   : > { %1147 = vmatpush.bf16.msra.mxu0 %v1129_v55  ;;  %1306 = vmatpush.msrb.mxu2 %v1237_v50 }
 0x22d   : > { %1421 = vmatmul.msk.bf16.vlgmr.msrb.gmra.mxu1 %vm666_vm9, %v2030_v48  ;;  %1322 = vmatpush.msrb.mxu3 %v1257_v45  ;;  %v1224_v48 = vld [vmem:[%s2301_s8 + $0xe0] sm:$0xff] }
 0x22e   : > { %1160 = vmatpush.bf16.msra.mxu1 %v1132_v38  ;;  %1307 = vmatpush.msrb.mxu2 %v1236_v17 }
 0x22f   : > { %1323 = vmatpush.msrb.mxu3 %v1256_v46 }
 0x230   : > { %1260 = vmatpush.msrb.mxu0 %v1211_v14  ;;  %1308 = vmatpush.msrb.mxu2 %v1235_v47  ;;  %v1044_v14 = vpop.permute.xlu2 %1043 }
 0x231   : > { %1324 = vmatpush.msrb.mxu3 %v1255_v32 }
 0x232   : > { %1280 = vmatpush.msrb.mxu1 %v1227_v39  ;;  %1261 = vmatpush.msrb.mxu0 %v1210_v28 }
 0x233   : > { %1309 = vmatpush.msrb.mxu2 %v1234_v51  ;;  %1325 = vmatpush.msrb.mxu3 %v1254_v30 }
 0x234   : > { %1281 = vmatpush.msrb.mxu1 %v1226_v26  ;;  %1262 = vmatpush.msrb.mxu0 %v1209_v1 }
 0x235   : > { %1427 = vmatmul.msk.bf16.vlgmr.msra.gmra.mxu3 %vm1124_vm10, %v1113_v41  ;;  %1310 = vmatpush.msrb.mxu2 %v1233_v22 }
 0x236   : > { %1282 = vmatpush.msrb.mxu1 %v1225_v27  ;;  %1263 = vmatpush.msrb.mxu0 %v1208_v43 }
 0x237   : > { %1326 = vmatpush.msrb.mxu3 %v1253_v49  ;;  %1311 = vmatpush.msrb.mxu2 %v1232_v57 }
 0x238   : > { %1283 = vmatpush.msrb.mxu1 %v1224_v48  ;;  %1264 = vmatpush.msrb.mxu0 %v1207_v5 }
 0x239   : > { %1327 = vmatpush.msrb.mxu3 %v1252_v58  ;;  %1312 = vmatpush.msrb.mxu2 %v1231_v56 }
 0x23a   : > { %1284 = vmatpush.msrb.mxu1 %v1223_v7  ;;  %1265 = vmatpush.msrb.mxu0 %v1206_v52 }
 0x23b   : > { %1424 = vmatmul.msk.bf16.vlgmr.msra.gmra.mxu0 %vm1124_vm10, %v1113_v41  ;;  %1328 = vmatpush.msrb.mxu3 %v1251_v59 }
 0x23c   : > { %1285 = vmatpush.msrb.mxu1 %v1222_v8  ;;  %1266 = vmatpush.msrb.mxu0 %v1205_v24 }
 0x23d   : > { %1425 = vmatmul.msk.bf16.vlgmr.msra.gmra.mxu1 %vm1124_vm10, %v1113_v41  ;;  %1313 = vmatpush.msrb.mxu2 %v1230_v61 }
 0x23e   : > { %1286 = vmatpush.msrb.mxu1 %v1221_v0  ;;  %1267 = vmatpush.msrb.mxu0 %v1204_v40 }
 0x23f   : > { %1329 = vmatpush.msrb.mxu3 %v1250_v62  ;;  %1314 = vmatpush.msrb.mxu2 %v1229_v13 }
 0x240   : > { %1287 = vmatpush.msrb.mxu1 %v1220_v44  ;;  %1268 = vmatpush.msrb.mxu0 %v1203_v29 }
 0x241   : > { %1330 = vmatpush.msrb.mxu3 %v1249_v15  ;;  %1315 = vmatpush.msrb.mxu2 %v1228_v16 }
 0x242   : > { %1288 = vmatpush.msrb.mxu1 %v1219_v60  ;;  %1269 = vmatpush.msrb.mxu0 %v1202_v10 }
 0x243   : > { %1331 = vmatpush.msrb.mxu3 %v1248_v21 }
 0x244   : > { %1289 = vmatpush.msrb.mxu1 %v1218_v12  ;;  %1270 = vmatpush.msrb.mxu0 %v1201_v54 }
 0x245   : > { %1332 = vmatpush.msrb.mxu3 %v1247_v20 }
 0x246   : > { %1290 = vmatpush.msrb.mxu1 %v1217_v53  ;;  %1271 = vmatpush.msrb.mxu0 %v1200_v18 }
 0x247   : > { %1333 = vmatpush.msrb.mxu3 %v1246_v19 }
 0x248   : > { %1291 = vmatpush.msrb.mxu1 %v1216_v9  ;;  %1272 = vmatpush.msrb.mxu0 %v1199_v23 }
 0x249   : > { %1334 = vmatpush.msrb.mxu3 %v1245_v33 }
 0x24a   : > { %1292 = vmatpush.msrb.mxu1 %v1215_v3  ;;  %1273 = vmatpush.msrb.mxu0 %v1198_v4 }
 0x24b   : > { %1335 = vmatpush.msrb.mxu3 %v1244_v37 }
 0x24c   : > { %1293 = vmatpush.msrb.mxu1 %v1214_v31  ;;  %1274 = vmatpush.msrb.mxu0 %v1197_v2 }
 0x24e   : > { %1294 = vmatpush.msrb.mxu1 %v1213_v6  ;;  %1275 = vmatpush.msrb.mxu0 %v1196_v34 }
 0x250   : > { %1295 = vmatpush.msrb.mxu1 %v1212_v35 }
 0x286   : > { %v1122_v41 = vpop.permute.xlu0 %1121 }
 0x29d   : > { %v1096_v36 = vpop.f32.mrf.mxu2 }
 0x29e   : > { %v1097_v25 = vadd.f32 %v1096_v36, %v1044_v14 }
 0x2a5   : > { %v1098_v11 = vpop.f32.mrf.mxu2 }
 0x2a8   : > { %v1109_v63 = vpop.f32.mrf.mxu3  ;;  %v1070_v55 = vpop.f32.mrf.mxu0 }
 0x2a9   : > { %v1110_v17 = vadd.f32 %v1109_v63, %v1044_v14  ;;  %v1071_v43 = vadd.f32 %v1070_v55, %v1044_v14 }
 0x2aa   : > { %v1083_v38 = vpop.f32.mrf.mxu1 }
 0x2ab   : > { %v1084_v32 = vadd.f32 %v1083_v38, %v1044_v14 }
 0x2ad   : > { %v1175_v39 = vpop.f32.mrf.mxu2 }
 0x2ae   : > { %v1176_v28 = vadd.f32 %v1175_v39, %v1122_v41 }
 0x2b0   : > { %v1111_v42 = vpop.f32.mrf.mxu3  ;;  %v1194_v26 = vadd.f32 %v1176_v28, %v1097_v25  ;;  %v1072_v50 = vpop.f32.mrf.mxu0 }
 0x2b2   : > { %v1085_v45 = vpop.f32.mrf.mxu1  ;;  %1316 = vmatmul.f32.vlgmr.msrb.gmra.mxu2 %v1194_v26 }
 0x2b5   : > { %v1177_v1 = vpop.f32.mrf.mxu2 }
 0x2b8   : > { %v1188_v27 = vpop.f32.mrf.mxu3  ;;  %v1149_v48 = vpop.f32.mrf.mxu0 }
 0x2b9   : > { %v1189_v46 = vadd.f32 %v1188_v27, %v1122_v41  ;;  %v1150_v7 = vadd.f32 %v1149_v48, %v1122_v41 }
 0x2ba   : > { %v1162_v47 = vpop.f32.mrf.mxu1 }
 0x2bb   : > { %v1195_v5 = vadd.f32 %v1189_v46, %v1110_v17  ;;  %v1163_v51 = vadd.f32 %v1162_v47, %v1122_v41  ;;  %v1192_v30 = vadd.f32 %v1150_v7, %v1071_v43 }
 0x2bd   : > { %v1193_v52 = vadd.f32 %v1163_v51, %v1084_v32  ;;  %1336 = vmatmul.f32.vlgmr.msrb.gmra.mxu3 %v1195_v5  ;;  %1276 = vmatmul.f32.vlgmr.msrb.gmra.mxu0 %v1192_v30 }
 0x2bf   : > { %1296 = vmatmul.f32.vlgmr.msrb.gmra.mxu1 %v1193_v52 }
 0x2c0   : > { %v1190_v8 = vpop.f32.mrf.mxu3  ;;  %v1151_v22 = vpop.f32.mrf.mxu0 }
 0x2c2   : > { %v1164_v49 = vpop.f32.mrf.mxu1 }
 0x335   : > { %v1317_v58 = vpop.f32.mrf.mxu2 }
 0x33a   : > { %v1277_v24 = vpop.f32.mrf.mxu0 }
 0x33c   : > { %v1297_v0 = vpop.f32.mrf.mxu1 }
 0x33d   : > { %v1298_v57 = vadd.f32 %v1297_v0, %v1277_v24 }
 0x33f   : > { %v1318_v40 = vadd.f32 %v1317_v58, %v1298_v57 }
 0x340   : > { %v1337_v44 = vpop.f32.mrf.mxu3 }
 0x341   : > { %v1338_v56 = vadd.f32 %v1337_v44, %v1318_v40 }
 0x343   : > { %1340 = vst [vmem:[%s332_s19] sm:$0xff] %v1338_v56 }
 0x344 PF: > { %s19_s30 = sadd.s32 1, %s1455_s30  }
 0x345   : > { %p16_p5 = scmp.ge.s32.totalorder %s19_s30, 4  }
 0x347   :  { %18 = sbr.rel (!%p16_p5) target bundleno = 1 (0x1), region = 93 }

</bundles_post_ra>
